<compile_context>
chip_gen: v7x
topology: tpu7x:2x2x1
jax: 0.10.0
libtpu: 0.0.40
codegen_flags: <defaults>
</compile_context>

<pallas_src>
import functools

import numpy as np
import jax
import jax.numpy as jnp
from jax.experimental import pallas as pl
from jax.experimental.pallas import tpu as pltpu


# ----------------------------------------------------------------------------
# Pallas kernel: grid = (batch groups, Mt column tiles).
# ----------------------------------------------------------------------------
def _efa_kernel(ir_ref, mt_ref, ca_ref, imask_ref, jmask_ref,
                final_ref, wrp_ref, *,
                G, C, width, HW, tn, n_tiles, taps_a, taps_m, sp_bias):
    n = pl.program_id(1)

    # ---- bilinear warp (one Mt column tile) + channel attention gate --------
    # ir block is (G*C, HW) native dtype; Mt tile is (HW, tn); f32 accumulate.
    ca = ca_ref[...].astype(jnp.float32)                          # (G*C, 1)
    wtile = jnp.dot(ir_ref[...], mt_ref[0],
                    preferred_element_type=jnp.float32) * ca      # (G*C, tn) f32
    if n_tiles == 1:
        wrp_ref[...] = wtile
    else:
        start = pl.multiple_of(n * tn, tn)
        wrp_ref[:, pl.ds(start, tn)] = wtile

    # ---- epilogue on the last column tile: spatial attention + residual -----
    @pl.when(n == n_tiles - 1)
    def _():
        wca = wrp_ref[...]                                        # (G*C, HW) f32
        wca3 = wca.reshape(G, C, HW)
        avg = jnp.mean(wca3, axis=1)                              # (G, HW)
        mx = jnp.max(wca3, axis=1)                                # (G, HW)

        # 7x7 conv (zero-padded, BN folded) as shifted FMAs via XLU rolls.
        # Vertical shifts (di*W) are shared between the avg/max maps by
        # stacking them on the sublane axis; the row-validity mask is applied
        # once per di and the column mask once per dj (hoisted out of the
        # 49-tap inner loop).
        st = jnp.concatenate([avg, mx], axis=0)                   # (2G, HW)
        za, zm = [], []
        for di in range(-3, 4):
            sh = (-di * width) % HW
            r = pltpu.roll(st, sh, axis=1) if sh else st
            r = r * imask_ref[di + 3:di + 4, :]                   # row validity
            za.append(r[:G, :])
            zm.append(r[G:, :])

        pre = jnp.full((G, HW), sp_bias, jnp.float32)
        for dj in range(-3, 4):
            s = None
            for di in range(-3, 4):
                t = (taps_a[di + 3][dj + 3] * za[di + 3]
                     + taps_m[di + 3][dj + 3] * zm[di + 3])
                s = t if s is None else s + t
            sh = (-dj) % HW
            if sh:
                s = pltpu.roll(s, sh, axis=1)
            pre = pre + jmask_ref[dj + 3:dj + 4, :] * s           # col validity

        silu = pre * jax.nn.sigmoid(pre)      # ultralytics Conv default act
        sa = jax.nn.sigmoid(silu)             # (G, HW)

        ir3 = ir_ref[...].reshape(G, C, HW).astype(jnp.float32)
        out = wca3 * sa[:, None, :] + ir3
        final_ref[...] = out.reshape(G * C, HW).astype(final_ref.dtype)


# ----------------------------------------------------------------------------
# Wrapper-side helpers: grid generation, warp matrix, masks, parameter setup.
# ----------------------------------------------------------------------------
def get_grid(Hmat, height, width):
    """Flattened version of the PyTorch get_grid: (Bm, 2, H*W), rows = (x, y).
    Kept in f32 regardless of feature dtype (sampling-coordinate accuracy)."""
    Hmat = Hmat.astype(jnp.float32)
    y = jnp.linspace(-1.0, 1.0, height, dtype=jnp.float32)
    x = jnp.linspace(-1.0, 1.0, width, dtype=jnp.float32)
    yy, xx = jnp.meshgrid(y, x, indexing="ij")
    ones = jnp.ones((height * width,), jnp.float32)
    pts = jnp.stack([xx.reshape(-1), yy.reshape(-1), ones], axis=0)   # (3, HW)
    t = jnp.einsum("bij,jp->bip", Hmat, pts)                          # (Bm, 3, HW)
    t = t / (t[:, 2:3, :] + 1e-8)       # matches the PyTorch reference exactly
    return t[:, :2, :]                                                # (Bm, 2, HW)


def build_warp_matrix(grid, height, width):
    """Mt (Bm, HW, HW) with warped = feat @ Mt[b]; equals F.grid_sample
    (bilinear, padding_mode='border', align_corners=True) on the flat layout."""
    HW = height * width
    gx, gy = grid[:, 0, :], grid[:, 1, :]                             # (Bm, HW)
    x = jnp.clip((gx + 1.0) * 0.5 * (width - 1), 0.0, float(width - 1))
    y = jnp.clip((gy + 1.0) * 0.5 * (height - 1), 0.0, float(height - 1))
    x0f, y0f = jnp.floor(x), jnp.floor(y)
    wx, wy = x - x0f, y - y0f
    x0 = x0f.astype(jnp.int32)
    y0 = y0f.astype(jnp.int32)
    x1 = jnp.minimum(x0 + 1, width - 1)
    y1 = jnp.minimum(y0 + 1, height - 1)
    q00 = y0 * width + x0
    q01 = y0 * width + x1
    q10 = y1 * width + x0
    q11 = y1 * width + x1
    rows = jnp.arange(HW, dtype=jnp.int32)[None, :, None]             # (1, HW_in, 1)

    def onehot(q, w):
        return (rows == q[:, None, :]).astype(jnp.float32) * w[:, None, :]

    Mt = (onehot(q00, (1.0 - wy) * (1.0 - wx)) +
          onehot(q01, (1.0 - wy) * wx) +
          onehot(q10, wy * (1.0 - wx)) +
          onehot(q11, wy * wx))
    return Mt                                                         # (Bm, HW, HW)


def _shift_masks(height, width):
    """(7, HW) row/column validity masks for the 7x7 conv implemented as rolls:
    imask[di+3][p] = 1 iff 0 <= row(p)+di < H;  jmask[dj+3][p] = 1 iff
    0 <= col(p)+dj < W (together they reproduce the conv's zero padding)."""
    HW = height * width
    i = np.arange(HW) // width
    j = np.arange(HW) % width
    imask = np.stack([((i + di >= 0) & (i + di < height)).astype(np.float32)
                      for di in range(-3, 4)], axis=0)
    jmask = np.stack([((j + dj >= 0) & (j + dj < width)).astype(np.float32)
                      for dj in range(-3, 4)], axis=0)
    return jnp.asarray(imask), jnp.asarray(jmask)


def _choose_group(B, C, HW, shared):
    """Pack G batch elements per grid step so the warp matmul M = G*C fills the
    MXU (target >= 256 rows), bounded by a scratch-VMEM row cap."""
    if not shared:
        return 1                       # per-batch Mt -> one batch per step
    row_cap = max(C, min(1024, (8 << 20) // max(HW * 4, 1)))
    best = 1
    for g in range(1, B + 1):
        if B % g:
            continue
        if g * C > row_cap and g > 1:
            break
        best = g
        if g * C >= 256:
            break
    return best


def _choose_tn(HW, itemsize):
    """Mt output-column tile: full HW if it fits a ~6 MiB budget, else the
    largest 128-multiple divisor of HW that does."""
    budget = 6 << 20
    if HW * HW * itemsize <= budget:
        return HW
    best = None
    for t in range(128, HW, 128):
        if HW % t == 0 and HW * t * itemsize <= budget:
            best = t
    if best is None:
        for t in range(128, HW, 128):
            if HW % t == 0:
                best = t
                break
    return best or HW


def init_params(channels, key):
    C = channels
    C16 = max(C // 16, 1)
    ks = jax.random.split(key, 9)
    s = 0.1

    # quality_assessment: AdaptiveAvgPool2d(1) -> Conv2d(C, C//16, 1) -> ReLU
    #                     -> Conv2d(C//16, 1, 1) -> Sigmoid   (runs in wrapper)
    qa_w1t = jax.random.normal(ks[0], (C, C16), jnp.float32) * s
    qa_b1 = jax.random.normal(ks[1], (C16,), jnp.float32) * 0.01
    qa_w2t = jax.random.normal(ks[2], (C16, 1), jnp.float32) * s
    qa_b2 = jax.random.normal(ks[3], (1,), jnp.float32) * 0.01

    # channel_attention: AdaptiveAvgPool2d(1) -> Conv2d(C, C//16, 1) -> ReLU
    #                    -> Conv2d(C//16, C, 1) -> Sigmoid      (runs in wrapper)
    ca_w1t = jax.random.normal(ks[4], (C, C16), jnp.float32) * s
    ca_b1 = jax.random.normal(ks[5], (C16,), jnp.float32) * 0.01
    ca_w2t = jax.random.normal(ks[6], (C16, C), jnp.float32) * s
    ca_b2 = jax.random.normal(ks[7], (C,), jnp.float32) * 0.01

    # spatial_attention: Conv(2, 1, 7, p=3) == conv2d(no bias) + BN(eval) + SiLU.
    # BatchNorm default eval stats (gamma=1, beta=0, mean=0, var=1, eps=1e-5)
    # are folded into the static tap weights + bias.
    # TODO(synk): fold real checkpoint BN statistics here when loading weights.
    w_sp = np.asarray(jax.random.normal(ks[8], (2, 7, 7), jnp.float32)) * s
    bn_scale = 1.0 / np.sqrt(1.0 + 1e-5)
    sp_taps = tuple(
        tuple(tuple(float(v) for v in row) for row in (w_sp[ch] * bn_scale))
        for ch in range(2))
    return dict(
        qa_w1t=qa_w1t, qa_b1=qa_b1, qa_w2t=qa_w2t, qa_b2=qa_b2,
        ca_w1t=ca_w1t, ca_b1=ca_b1, ca_w2t=ca_w2t, ca_b2=ca_b2,
        sp_taps=sp_taps, sp_bias=0.0)


# ----------------------------------------------------------------------------
# Forward pass wrapper.
# ----------------------------------------------------------------------------
def efficient_feature_alignment(rgb_feat, ir_feat, homography, params, *,
                                mt_dtype=None):
    B, C, Hh, Ww = rgb_feat.shape
    HW = Hh * Ww
    feat_dtype = rgb_feat.dtype
    # mt_dtype=jnp.bfloat16 is the fast MXU option on v6e/v7x (weights in [0,1]);
    # default keeps the feature dtype for exact parity with the f32 reference.
    mt_dtype = feat_dtype if mt_dtype is None else mt_dtype

    shared = (homography.ndim == 2)
    H32 = homography.astype(jnp.float32)           # grid math stays in f32
    grid_H = H32[None] if shared else H32          # (Bm, 3, 3)
    cur_H = (jnp.broadcast_to(H32[None], (B, 3, 3)) if shared else H32
             ).astype(feat_dtype)

    # Warp sampling matrix built ONCE, in f32; cast only at the end.
    grid = get_grid(grid_H, Hh, Ww)                            # (Bm, 2, HW)
    Mt32 = build_warp_matrix(grid, Hh, Ww)                     # (Bm, HW, HW) f32
    Mt = Mt32.astype(mt_dtype)
    # TODO(synk): for per-batch homographies at large HW, switch to the
    # index/weight gather form of the warp instead of a dense per-batch Mt.

    ir2d = ir_feat.reshape(B * C, HW)              # native dtype, no upcast

    # ---- tiny pooled MLPs (quality heads + channel attention) in plain XLA ----
    # mean_p(warped) == ir @ mean(Mt, axis=-1), so no full warped tensor is
    # needed outside the kernel and rgb never enters the kernel at all.
    pooled_rgb = jnp.mean(rgb_feat.astype(jnp.float32), axis=(2, 3))     # (B, C)
    mt_colmean = jnp.mean(Mt32, axis=-1)                                 # (Bm, HW)
    ir32 = ir_feat.reshape(B, C, HW).astype(jnp.float32)
    if shared:
        pooled_wrp = jnp.einsum("bcq,q->bc", ir32, mt_colmean[0])        # (B, C)
    else:
        pooled_wrp = jnp.einsum("bcq,bq->bc", ir32, mt_colmean)

    def mlp_sigmoid(x, w1t, b1, w2t, b2):
        h = jax.nn.relu(x @ w1t + b1)
        return jax.nn.sigmoid(h @ w2t + b2)

    q_rgb = mlp_sigmoid(pooled_rgb, params["qa_w1t"], params["qa_b1"],
                        params["qa_w2t"], params["qa_b2"])               # (B, 1)
    q_ir = mlp_sigmoid(pooled_wrp, params["qa_w1t"], params["qa_b1"],
                       params["qa_w2t"], params["qa_b2"])                # (B, 1)
    ca = mlp_sigmoid(pooled_wrp, params["ca_w1t"], params["ca_b1"],
                     params["ca_w2t"], params["ca_b2"])                  # (B, C)
    ca2d = ca.reshape(B * C, 1).astype(feat_dtype)

    imask, jmask = _shift_masks(Hh, Ww)                                  # (7, HW)

    # ---- grid / tiling choices ----
    G = _choose_group(B, C, HW, shared)
    NG = B // G
    mt_itemsize = jnp.dtype(mt_dtype).itemsize
    tn = _choose_tn(HW, mt_itemsize)
    n_tiles = HW // tn

    mt_idx = (lambda g, n: (0, 0, n)) if shared else (lambda g, n: (g, 0, n))
    in_specs = [
        pl.BlockSpec((G * C, HW), lambda g, n: (g, 0)),       # ir (resident over n)
        pl.BlockSpec((1, HW, tn), mt_idx),                    # Mt column tile
        pl.BlockSpec((G * C, 1), lambda g, n: (g, 0)),        # channel attention
        pl.BlockSpec((7, HW), lambda g, n: (0, 0)),           # row validity masks
        pl.BlockSpec((7, HW), lambda g, n: (0, 0)),           # col validity masks
    ]
    out_specs = pl.BlockSpec((G * C, HW), lambda g, n: (g, 0))
    out_shape = jax.ShapeDtypeStruct((B * C, HW), feat_dtype)

    # Raise the scoped VMEM limit only when the working set actually needs it.
    feat_itemsize = jnp.dtype(feat_dtype).itemsize
    est = (2 * HW * tn * mt_itemsize             # Mt tile (double buffered)
           + 4 * G * C * HW * feat_itemsize      # ir + out (double buffered)
           + 4 * G * C * HW                      # f32 warped scratch
           + (2 << 20))
    vmem_limit = None if est < (24 << 20) else int(min(est + (8 << 20), 112 << 20))

    kernel = functools.partial(
        _efa_kernel, G=G, C=C, width=Ww, HW=HW, tn=tn, n_tiles=n_tiles,
        taps_a=params["sp_taps"][0], taps_m=params["sp_taps"][1],
        sp_bias=params["sp_bias"])

    final2d = pl.pallas_call(
        kernel,
        out_shape=out_shape,
        grid_spec=pltpu.PrefetchScalarGridSpec(
            num_scalar_prefetch=0,
            grid=(NG, n_tiles),
            in_specs=in_specs,
            out_specs=out_specs,
            scratch_shapes=[pltpu.VMEM((G * C, HW), jnp.float32)],
        ),
        compiler_params=pltpu.CompilerParams(
            dimension_semantics=("parallel", "arbitrary"),
            vmem_limit_bytes=vmem_limit),
    )(ir2d, Mt, ca2d, imask, jmask)

    final_ir = final2d.reshape(B, C, Hh, Ww)
    rgb_quality = q_rgb.reshape(B, 1, 1, 1).astype(feat_dtype)
    ir_quality = q_ir.reshape(B, 1, 1, 1).astype(feat_dtype)
    return final_ir, cur_H, rgb_quality, ir_quality


if __name__ == "__main__":
    key = jax.random.PRNGKey(0)
    B, C, H, W = 2, 32, 16, 16          # channels must be >= 16 (C // 16 >= 1)

    k_rgb, k_ir, k_par = jax.random.split(key, 3)
    rgb_feat = jax.random.normal(k_rgb, (B, C, H, W), jnp.float32)
    ir_feat = jax.random.normal(k_ir, (B, C, H, W), jnp.float32)
    homography = jnp.array([[1.0, 0.02, 0.05],
                            [-0.01, 1.0, -0.03],
                            [0.001, 0.0, 1.0]], jnp.float32)

    params = init_params(C, k_par)

    final_ir, cur_H, rgb_q, ir_q = efficient_feature_alignment(
        rgb_feat, ir_feat, homography, params)
    jax.block_until_ready((final_ir, cur_H, rgb_q, ir_q))

    assert final_ir.shape == (B, C, H, W)
    assert cur_H.shape == (B, 3, 3)
    assert rgb_q.shape == (B, 1, 1, 1) and ir_q.shape == (B, 1, 1, 1)
    assert bool(jnp.all(jnp.isfinite(final_ir)))
    assert bool(jnp.all(jnp.isfinite(rgb_q))) and bool(jnp.all(jnp.isfinite(ir_q)))
    print("KERNEL_OK")
</pallas_src>

<mosaic_0001>
module attributes {stable_mosaic.version = 11 : i64} {
  func.func @_efa_kernel(%arg0: i32, %arg1: i32, %arg2: memref<64x256xf32, #tpu.memory_space<vmem>>, %arg3: memref<1x256x256xf32, #tpu.memory_space<vmem>>, %arg4: memref<64x1xf32, #tpu.memory_space<vmem>>, %arg5: memref<7x256xf32, #tpu.memory_space<vmem>>, %arg6: memref<7x256xf32, #tpu.memory_space<vmem>>, %arg7: memref<64x256xf32, #tpu.memory_space<vmem>>, %arg8: memref<64x256xf32, #tpu.memory_space<vmem>>) attributes {dimension_semantics = [#tpu.dimension_semantics<parallel>, #tpu.dimension_semantics<arbitrary>], iteration_bounds = array<i64: 1, 1>, scalar_prefetch = 0 : i64, scratch_operands = 1 : i64, tpu.core_type = #tpu.core_type<tc>, window_params = [{transform_indices = @transform_0, window_bounds = array<i64: 64, 256>}, {transform_indices = @transform_1, window_bounds = array<i64: 1, 256, 256>}, {transform_indices = @transform_2, window_bounds = array<i64: 64, 1>}, {pipeline_mode = #tpu.pipeline_mode<synchronous>, transform_indices = @transform_3, window_bounds = array<i64: 7, 256>}, {pipeline_mode = #tpu.pipeline_mode<synchronous>, transform_indices = @transform_4, window_bounds = array<i64: 7, 256>}, {transform_indices = @transform_5, window_bounds = array<i64: 64, 256>}]} {
    %c0 = arith.constant 0 : index
    %c0_0 = arith.constant 0 : index
    %0 = vector.load %arg4[%c0, %c0_0] : memref<64x1xf32, #tpu.memory_space<vmem>>, vector<64x1xf32>
    %c0_1 = arith.constant 0 : index
    %c0_2 = arith.constant 0 : index
    %1 = vector.load %arg2[%c0_1, %c0_2] : memref<64x256xf32, #tpu.memory_space<vmem>>, vector<64x256xf32>
    %c0_3 = arith.constant 0 : index
    %c0_4 = arith.constant 0 : index
    %c0_5 = arith.constant 0 : index
    %2 = vector.load %arg3[%c0_3, %c0_4, %c0_5] : memref<1x256x256xf32, #tpu.memory_space<vmem>>, vector<1x256x256xf32>
    %3 = vector.shape_cast %2 : vector<1x256x256xf32> to vector<256x256xf32>
    %cst = arith.constant dense<0.000000e+00> : vector<64x256xf32>
    %4 = tpu.matmul %1, %3, %cst {dimension_numbers = #tpu.dot_dimension_numbers<[1], [0], [0], [1], [0, 0, 1, 1], [], []>} : vector<64x256xf32>, vector<256x256xf32>, vector<64x256xf32> -> vector<64x256xf32>
    %5 = vector.broadcast %0 : vector<64x1xf32> to vector<64x256xf32>
    %6 = arith.mulf %4, %5 : vector<64x256xf32>
    %c0_6 = arith.constant 0 : index
    %c0_7 = arith.constant 0 : index
    %7 = vector.load %arg8[%c0_6, %c0_7] : memref<64x256xf32, #tpu.memory_space<vmem>>, vector<64x256xf32>
    tpu.vector_store %arg8[%c0_6, %c0_7], %6 {strides = array<i32>} : memref<64x256xf32, #tpu.memory_space<vmem>>, vector<64x256xf32>,
    %c0_i32 = arith.constant 0 : i32
    %8 = arith.cmpi eq, %arg1, %c0_i32 : i32
    %9 = arith.extui %8 : i1 to i32
    %c0_i32_8 = arith.constant 0 : i32
    %10 = arith.cmpi ne, %9, %c0_i32_8 : i32
    scf.if %10 {
      %c0_9 = arith.constant 0 : index
      %c0_10 = arith.constant 0 : index
      %11 = vector.load %arg8[%c0_9, %c0_10] : memref<64x256xf32, #tpu.memory_space<vmem>>, vector<64x256xf32>
      %12 = vector.shape_cast %11 : vector<64x256xf32> to vector<2x32x256xf32>
      %cst_11 = arith.constant dense<0.000000e+00> : vector<2x256xf32>
      %13 = vector.multi_reduction <add>, %12, %cst_11 [1] : vector<2x32x256xf32> to vector<2x256xf32>
      %cst_12 = arith.constant 3.200000e+01 : f32
      %14 = vector.broadcast %cst_12 : f32 to vector<2x256xf32>
      %15 = arith.divf %13, %14 : vector<2x256xf32>
      %cst_13 = arith.constant dense<0xFF800000> : vector<2x256xf32>
      %16 = vector.multi_reduction <maximumf>, %12, %cst_13 [1] : vector<2x32x256xf32> to vector<2x256xf32>
      %17 = tpu.concatenate %15, %16 in 0 : vector<2x256xf32>, vector<2x256xf32> -> vector<4x256xf32>
      %c48_i32 = arith.constant 48 : i32
      %18 = tpu.dynamic_rotate %17 by %c48_i32 dim 1 : vector<4x256xf32>, i32 -> vector<4x256xf32>
      %c0_14 = arith.constant 0 : index
      %c0_15 = arith.constant 0 : index
      %19 = vector.load %arg5[%c0_14, %c0_15] : memref<7x256xf32, #tpu.memory_space<vmem>>, vector<1x256xf32>
      %20 = vector.broadcast %19 : vector<1x256xf32> to vector<4x256xf32>
      %21 = arith.mulf %18, %20 : vector<4x256xf32>
      %22 = vector.extract_strided_slice %21 {offsets = [0, 0], sizes = [2, 256], strides = [1, 1]} : vector<4x256xf32> to vector<2x256xf32>
      %23 = vector.extract_strided_slice %21 {offsets = [2, 0], sizes = [2, 256], strides = [1, 1]} : vector<4x256xf32> to vector<2x256xf32>
      %c32_i32 = arith.constant 32 : i32
      %24 = tpu.dynamic_rotate %17 by %c32_i32 dim 1 : vector<4x256xf32>, i32 -> vector<4x256xf32>
      %c1 = arith.constant 1 : index
      %c0_16 = arith.constant 0 : index
      %25 = vector.load %arg5[%c1, %c0_16] : memref<7x256xf32, #tpu.memory_space<vmem>>, vector<1x256xf32>
      %26 = vector.broadcast %25 : vector<1x256xf32> to vector<4x256xf32>
      %27 = arith.mulf %24, %26 : vector<4x256xf32>
      %28 = vector.extract_strided_slice %27 {offsets = [0, 0], sizes = [2, 256], strides = [1, 1]} : vector<4x256xf32> to vector<2x256xf32>
      %29 = vector.extract_strided_slice %27 {offsets = [2, 0], sizes = [2, 256], strides = [1, 1]} : vector<4x256xf32> to vector<2x256xf32>
      %c16_i32 = arith.constant 16 : i32
      %30 = tpu.dynamic_rotate %17 by %c16_i32 dim 1 : vector<4x256xf32>, i32 -> vector<4x256xf32>
      %c2 = arith.constant 2 : index
      %c0_17 = arith.constant 0 : index
      %31 = vector.load %arg5[%c2, %c0_17] : memref<7x256xf32, #tpu.memory_space<vmem>>, vector<1x256xf32>
      %32 = vector.broadcast %31 : vector<1x256xf32> to vector<4x256xf32>
      %33 = arith.mulf %30, %32 : vector<4x256xf32>
      %34 = vector.extract_strided_slice %33 {offsets = [0, 0], sizes = [2, 256], strides = [1, 1]} : vector<4x256xf32> to vector<2x256xf32>
      %35 = vector.extract_strided_slice %33 {offsets = [2, 0], sizes = [2, 256], strides = [1, 1]} : vector<4x256xf32> to vector<2x256xf32>
      %c3 = arith.constant 3 : index
      %c0_18 = arith.constant 0 : index
      %36 = vector.load %arg5[%c3, %c0_18] : memref<7x256xf32, #tpu.memory_space<vmem>>, vector<1x256xf32>
      %37 = vector.broadcast %36 : vector<1x256xf32> to vector<4x256xf32>
      %38 = arith.mulf %17, %37 : vector<4x256xf32>
      %39 = vector.extract_strided_slice %38 {offsets = [0, 0], sizes = [2, 256], strides = [1, 1]} : vector<4x256xf32> to vector<2x256xf32>
      %40 = vector.extract_strided_slice %38 {offsets = [2, 0], sizes = [2, 256], strides = [1, 1]} : vector<4x256xf32> to vector<2x256xf32>
      %c240_i32 = arith.constant 240 : i32
      %41 = tpu.dynamic_rotate %17 by %c240_i32 dim 1 : vector<4x256xf32>, i32 -> vector<4x256xf32>
      %c4 = arith.constant 4 : index
      %c0_19 = arith.constant 0 : index
      %42 = vector.load %arg5[%c4, %c0_19] : memref<7x256xf32, #tpu.memory_space<vmem>>, vector<1x256xf32>
      %43 = vector.broadcast %42 : vector<1x256xf32> to vector<4x256xf32>
      %44 = arith.mulf %41, %43 : vector<4x256xf32>
      %45 = vector.extract_strided_slice %44 {offsets = [0, 0], sizes = [2, 256], strides = [1, 1]} : vector<4x256xf32> to vector<2x256xf32>
      %46 = vector.extract_strided_slice %44 {offsets = [2, 0], sizes = [2, 256], strides = [1, 1]} : vector<4x256xf32> to vector<2x256xf32>
      %c224_i32 = arith.constant 224 : i32
      %47 = tpu.dynamic_rotate %17 by %c224_i32 dim 1 : vector<4x256xf32>, i32 -> vector<4x256xf32>
      %c5 = arith.constant 5 : index
      %c0_20 = arith.constant 0 : index
      %48 = vector.load %arg5[%c5, %c0_20] : memref<7x256xf32, #tpu.memory_space<vmem>>, vector<1x256xf32>
      %49 = vector.broadcast %48 : vector<1x256xf32> to vector<4x256xf32>
      %50 = arith.mulf %47, %49 : vector<4x256xf32>
      %51 = vector.extract_strided_slice %50 {offsets = [0, 0], sizes = [2, 256], strides = [1, 1]} : vector<4x256xf32> to vector<2x256xf32>
      %52 = vector.extract_strided_slice %50 {offsets = [2, 0], sizes = [2, 256], strides = [1, 1]} : vector<4x256xf32> to vector<2x256xf32>
      %c208_i32 = arith.constant 208 : i32
      %53 = tpu.dynamic_rotate %17 by %c208_i32 dim 1 : vector<4x256xf32>, i32 -> vector<4x256xf32>
      %c6 = arith.constant 6 : index
      %c0_21 = arith.constant 0 : index
      %54 = vector.load %arg5[%c6, %c0_21] : memref<7x256xf32, #tpu.memory_space<vmem>>, vector<1x256xf32>
      %55 = vector.broadcast %54 : vector<1x256xf32> to vector<4x256xf32>
      %56 = arith.mulf %53, %55 : vector<4x256xf32>
      %57 = vector.extract_strided_slice %56 {offsets = [0, 0], sizes = [2, 256], strides = [1, 1]} : vector<4x256xf32> to vector<2x256xf32>
      %58 = vector.extract_strided_slice %56 {offsets = [2, 0], sizes = [2, 256], strides = [1, 1]} : vector<4x256xf32> to vector<2x256xf32>
      %cst_22 = arith.constant 0.000000e+00 : f32
      %59 = vector.broadcast %cst_22 : f32 to vector<2x256xf32>
      %cst_23 = arith.constant -9.806630e-02 : f32
      %60 = vector.broadcast %cst_23 : f32 to vector<2x256xf32>
      %61 = arith.mulf %60, %22 : vector<2x256xf32>
      %cst_24 = arith.constant -3.657500e-02 : f32
      %62 = vector.broadcast %cst_24 : f32 to vector<2x256xf32>
      %63 = arith.mulf %62, %23 : vector<2x256xf32>
      %64 = arith.addf %61, %63 : vector<2x256xf32>
      %cst_25 = arith.constant 0.0201473664 : f32
      %65 = vector.broadcast %cst_25 : f32 to vector<2x256xf32>
      %66 = arith.mulf %65, %28 : vector<2x256xf32>
      %cst_26 = arith.constant 0.0810762569 : f32
      %67 = vector.broadcast %cst_26 : f32 to vector<2x256xf32>
      %68 = arith.mulf %67, %29 : vector<2x256xf32>
      %69 = arith.addf %66, %68 : vector<2x256xf32>
      %70 = arith.addf %64, %69 : vector<2x256xf32>
      %cst_27 = arith.constant 0.131281823 : f32
      %71 = vector.broadcast %cst_27 : f32 to vector<2x256xf32>
      %72 = arith.mulf %71, %34 : vector<2x256xf32>
      %cst_28 = arith.constant 0.220636413 : f32
      %73 = vector.broadcast %cst_28 : f32 to vector<2x256xf32>
      %74 = arith.mulf %73, %35 : vector<2x256xf32>
      %75 = arith.addf %72, %74 : vector<2x256xf32>
      %76 = arith.addf %70, %75 : vector<2x256xf32>
      %cst_29 = arith.constant -0.0723105744 : f32
      %77 = vector.broadcast %cst_29 : f32 to vector<2x256xf32>
      %78 = arith.mulf %77, %39 : vector<2x256xf32>
      %cst_30 = arith.constant -0.0657350868 : f32
      %79 = vector.broadcast %cst_30 : f32 to vector<2x256xf32>
      %80 = arith.mulf %79, %40 : vector<2x256xf32>
      %81 = arith.addf %78, %80 : vector<2x256xf32>
      %82 = arith.addf %76, %81 : vector<2x256xf32>
      %cst_31 = arith.constant -0.123970702 : f32
      %83 = vector.broadcast %cst_31 : f32 to vector<2x256xf32>
      %84 = arith.mulf %83, %45 : vector<2x256xf32>
      %cst_32 = arith.constant -0.0169695448 : f32
      %85 = vector.broadcast %cst_32 : f32 to vector<2x256xf32>
      %86 = arith.mulf %85, %46 : vector<2x256xf32>
      %87 = arith.addf %84, %86 : vector<2x256xf32>
      %88 = arith.addf %82, %87 : vector<2x256xf32>
      %cst_33 = arith.constant -0.087691456 : f32
      %89 = vector.broadcast %cst_33 : f32 to vector<2x256xf32>
      %90 = arith.mulf %89, %51 : vector<2x256xf32>
      %cst_34 = arith.constant -0.0423244834 : f32
      %91 = vector.broadcast %cst_34 : f32 to vector<2x256xf32>
      %92 = arith.mulf %91, %52 : vector<2x256xf32>
      %93 = arith.addf %90, %92 : vector<2x256xf32>
      %94 = arith.addf %88, %93 : vector<2x256xf32>
      %cst_35 = arith.constant -0.0231070817 : f32
      %95 = vector.broadcast %cst_35 : f32 to vector<2x256xf32>
      %96 = arith.mulf %95, %57 : vector<2x256xf32>
      %cst_36 = arith.constant -0.0225193407 : f32
      %97 = vector.broadcast %cst_36 : f32 to vector<2x256xf32>
      %98 = arith.mulf %97, %58 : vector<2x256xf32>
      %99 = arith.addf %96, %98 : vector<2x256xf32>
      %100 = arith.addf %94, %99 : vector<2x256xf32>
      %c3_i32 = arith.constant 3 : i32
      %101 = tpu.dynamic_rotate %100 by %c3_i32 dim 1 : vector<2x256xf32>, i32 -> vector<2x256xf32>
      %c0_37 = arith.constant 0 : index
      %c0_38 = arith.constant 0 : index
      %102 = vector.load %arg6[%c0_37, %c0_38] : memref<7x256xf32, #tpu.memory_space<vmem>>, vector<1x256xf32>
      %103 = vector.broadcast %102 : vector<1x256xf32> to vector<2x256xf32>
      %104 = arith.mulf %103, %101 : vector<2x256xf32>
      %105 = arith.addf %59, %104 : vector<2x256xf32>
      %cst_39 = arith.constant 0.0632354915 : f32
      %106 = vector.broadcast %cst_39 : f32 to vector<2x256xf32>
      %107 = arith.mulf %106, %22 : vector<2x256xf32>
      %cst_40 = arith.constant 0.208108455 : f32
      %108 = vector.broadcast %cst_40 : f32 to vector<2x256xf32>
      %109 = arith.mulf %108, %23 : vector<2x256xf32>
      %110 = arith.addf %107, %109 : vector<2x256xf32>
      %cst_41 = arith.constant -0.0303038042 : f32
      %111 = vector.broadcast %cst_41 : f32 to vector<2x256xf32>
      %112 = arith.mulf %111, %28 : vector<2x256xf32>
      %cst_42 = arith.constant 0.041853603 : f32
      %113 = vector.broadcast %cst_42 : f32 to vector<2x256xf32>
      %114 = arith.mulf %113, %29 : vector<2x256xf32>
      %115 = arith.addf %112, %114 : vector<2x256xf32>
      %116 = arith.addf %110, %115 : vector<2x256xf32>
      %cst_43 = arith.constant -0.0356233083 : f32
      %117 = vector.broadcast %cst_43 : f32 to vector<2x256xf32>
      %118 = arith.mulf %117, %34 : vector<2x256xf32>
      %cst_44 = arith.constant 0.028746713 : f32
      %119 = vector.broadcast %cst_44 : f32 to vector<2x256xf32>
      %120 = arith.mulf %119, %35 : vector<2x256xf32>
      %121 = arith.addf %118, %120 : vector<2x256xf32>
      %122 = arith.addf %116, %121 : vector<2x256xf32>
      %cst_45 = arith.constant 0.0238278676 : f32
      %123 = vector.broadcast %cst_45 : f32 to vector<2x256xf32>
      %124 = arith.mulf %123, %39 : vector<2x256xf32>
      %cst_46 = arith.constant 0.0786399692 : f32
      %125 = vector.broadcast %cst_46 : f32 to vector<2x256xf32>
      %126 = arith.mulf %125, %40 : vector<2x256xf32>
      %127 = arith.addf %124, %126 : vector<2x256xf32>
      %128 = arith.addf %122, %127 : vector<2x256xf32>
      %cst_47 = arith.constant 0.0412689485 : f32
      %129 = vector.broadcast %cst_47 : f32 to vector<2x256xf32>
      %130 = arith.mulf %129, %45 : vector<2x256xf32>
      %cst_48 = arith.constant 7.631410e-02 : f32
      %131 = vector.broadcast %cst_48 : f32 to vector<2x256xf32>
      %132 = arith.mulf %131, %46 : vector<2x256xf32>
      %133 = arith.addf %130, %132 : vector<2x256xf32>
      %134 = arith.addf %128, %133 : vector<2x256xf32>
      %cst_49 = arith.constant -0.0834276303 : f32
      %135 = vector.broadcast %cst_49 : f32 to vector<2x256xf32>
      %136 = arith.mulf %135, %51 : vector<2x256xf32>
      %cst_50 = arith.constant 0.0487507433 : f32
      %137 = vector.broadcast %cst_50 : f32 to vector<2x256xf32>
      %138 = arith.mulf %137, %52 : vector<2x256xf32>
      %139 = arith.addf %136, %138 : vector<2x256xf32>
      %140 = arith.addf %134, %139 : vector<2x256xf32>
      %cst_51 = arith.constant 0.0208583884 : f32
      %141 = vector.broadcast %cst_51 : f32 to vector<2x256xf32>
      %142 = arith.mulf %141, %57 : vector<2x256xf32>
      %cst_52 = arith.constant 0.0151802311 : f32
      %143 = vector.broadcast %cst_52 : f32 to vector<2x256xf32>
      %144 = arith.mulf %143, %58 : vector<2x256xf32>
      %145 = arith.addf %142, %144 : vector<2x256xf32>
      %146 = arith.addf %140, %145 : vector<2x256xf32>
      %c2_i32 = arith.constant 2 : i32
      %147 = tpu.dynamic_rotate %146 by %c2_i32 dim 1 : vector<2x256xf32>, i32 -> vector<2x256xf32>
      %c1_53 = arith.constant 1 : index
      %c0_54 = arith.constant 0 : index
      %148 = vector.load %arg6[%c1_53, %c0_54] : memref<7x256xf32, #tpu.memory_space<vmem>>, vector<1x256xf32>
      %149 = vector.broadcast %148 : vector<1x256xf32> to vector<2x256xf32>
      %150 = arith.mulf %149, %147 : vector<2x256xf32>
      %151 = arith.addf %105, %150 : vector<2x256xf32>
      %cst_55 = arith.constant 0.0497544445 : f32
      %152 = vector.broadcast %cst_55 : f32 to vector<2x256xf32>
      %153 = arith.mulf %152, %22 : vector<2x256xf32>
      %cst_56 = arith.constant -0.144735932 : f32
      %154 = vector.broadcast %cst_56 : f32 to vector<2x256xf32>
      %155 = arith.mulf %154, %23 : vector<2x256xf32>
      %156 = arith.addf %153, %155 : vector<2x256xf32>
      %cst_57 = arith.constant -0.0161439236 : f32
      %157 = vector.broadcast %cst_57 : f32 to vector<2x256xf32>
      %158 = arith.mulf %157, %28 : vector<2x256xf32>
      %cst_58 = arith.constant -0.13101767 : f32
      %159 = vector.broadcast %cst_58 : f32 to vector<2x256xf32>
      %160 = arith.mulf %159, %29 : vector<2x256xf32>
      %161 = arith.addf %158, %160 : vector<2x256xf32>
      %162 = arith.addf %156, %161 : vector<2x256xf32>
      %cst_59 = arith.constant -0.12509121 : f32
      %163 = vector.broadcast %cst_59 : f32 to vector<2x256xf32>
      %164 = arith.mulf %163, %34 : vector<2x256xf32>
      %cst_60 = arith.constant -0.0664370731 : f32
      %165 = vector.broadcast %cst_60 : f32 to vector<2x256xf32>
      %166 = arith.mulf %165, %35 : vector<2x256xf32>
      %167 = arith.addf %164, %166 : vector<2x256xf32>
      %168 = arith.addf %162, %167 : vector<2x256xf32>
      %cst_61 = arith.constant 0.0343063474 : f32
      %169 = vector.broadcast %cst_61 : f32 to vector<2x256xf32>
      %170 = arith.mulf %169, %39 : vector<2x256xf32>
      %cst_62 = arith.constant -0.155155286 : f32
      %171 = vector.broadcast %cst_62 : f32 to vector<2x256xf32>
      %172 = arith.mulf %171, %40 : vector<2x256xf32>
      %173 = arith.addf %170, %172 : vector<2x256xf32>
      %174 = arith.addf %168, %173 : vector<2x256xf32>
      %cst_63 = arith.constant -0.107898228 : f32
      %175 = vector.broadcast %cst_63 : f32 to vector<2x256xf32>
      %176 = arith.mulf %175, %45 : vector<2x256xf32>
      %cst_64 = arith.constant -0.127562523 : f32
      %177 = vector.broadcast %cst_64 : f32 to vector<2x256xf32>
      %178 = arith.mulf %177, %46 : vector<2x256xf32>
      %179 = arith.addf %176, %178 : vector<2x256xf32>
      %180 = arith.addf %174, %179 : vector<2x256xf32>
      %cst_65 = arith.constant 0.0552954301 : f32
      %181 = vector.broadcast %cst_65 : f32 to vector<2x256xf32>
      %182 = arith.mulf %181, %51 : vector<2x256xf32>
      %cst_66 = arith.constant -0.150483981 : f32
      %183 = vector.broadcast %cst_66 : f32 to vector<2x256xf32>
      %184 = arith.mulf %183, %52 : vector<2x256xf32>
      %185 = arith.addf %182, %184 : vector<2x256xf32>
      %186 = arith.addf %180, %185 : vector<2x256xf32>
      %cst_67 = arith.constant 0.0636993647 : f32
      %187 = vector.broadcast %cst_67 : f32 to vector<2x256xf32>
      %188 = arith.mulf %187, %57 : vector<2x256xf32>
      %cst_68 = arith.constant -0.0583149567 : f32
      %189 = vector.broadcast %cst_68 : f32 to vector<2x256xf32>
      %190 = arith.mulf %189, %58 : vector<2x256xf32>
      %191 = arith.addf %188, %190 : vector<2x256xf32>
      %192 = arith.addf %186, %191 : vector<2x256xf32>
      %c1_i32 = arith.constant 1 : i32
      %193 = tpu.dynamic_rotate %192 by %c1_i32 dim 1 : vector<2x256xf32>, i32 -> vector<2x256xf32>
      %c2_69 = arith.constant 2 : index
      %c0_70 = arith.constant 0 : index
      %194 = vector.load %arg6[%c2_69, %c0_70] : memref<7x256xf32, #tpu.memory_space<vmem>>, vector<1x256xf32>
      %195 = vector.broadcast %194 : vector<1x256xf32> to vector<2x256xf32>
      %196 = arith.mulf %195, %193 : vector<2x256xf32>
      %197 = arith.addf %151, %196 : vector<2x256xf32>
      %cst_71 = arith.constant -0.187290415 : f32
      %198 = vector.broadcast %cst_71 : f32 to vector<2x256xf32>
      %199 = arith.mulf %198, %22 : vector<2x256xf32>
      %cst_72 = arith.constant -0.0653749406 : f32
      %200 = vector.broadcast %cst_72 : f32 to vector<2x256xf32>
      %201 = arith.mulf %200, %23 : vector<2x256xf32>
      %202 = arith.addf %199, %201 : vector<2x256xf32>
      %cst_73 = arith.constant -0.0776812881 : f32
      %203 = vector.broadcast %cst_73 : f32 to vector<2x256xf32>
      %204 = arith.mulf %203, %28 : vector<2x256xf32>
      %cst_74 = arith.constant 0.00305723934 : f32
      %205 = vector.broadcast %cst_74 : f32 to vector<2x256xf32>
      %206 = arith.mulf %205, %29 : vector<2x256xf32>
      %207 = arith.addf %204, %206 : vector<2x256xf32>
      %208 = arith.addf %202, %207 : vector<2x256xf32>
      %cst_75 = arith.constant 0.0404210426 : f32
      %209 = vector.broadcast %cst_75 : f32 to vector<2x256xf32>
      %210 = arith.mulf %209, %34 : vector<2x256xf32>
      %cst_76 = arith.constant 8.49151401E-4 : f32
      %211 = vector.broadcast %cst_76 : f32 to vector<2x256xf32>
      %212 = arith.mulf %211, %35 : vector<2x256xf32>
      %213 = arith.addf %210, %212 : vector<2x256xf32>
      %214 = arith.addf %208, %213 : vector<2x256xf32>
      %cst_77 = arith.constant -0.00418846775 : f32
      %215 = vector.broadcast %cst_77 : f32 to vector<2x256xf32>
      %216 = arith.mulf %215, %39 : vector<2x256xf32>
      %cst_78 = arith.constant -0.116696127 : f32
      %217 = vector.broadcast %cst_78 : f32 to vector<2x256xf32>
      %218 = arith.mulf %217, %40 : vector<2x256xf32>
      %219 = arith.addf %216, %218 : vector<2x256xf32>
      %220 = arith.addf %214, %219 : vector<2x256xf32>
      %cst_79 = arith.constant 0.128409043 : f32
      %221 = vector.broadcast %cst_79 : f32 to vector<2x256xf32>
      %222 = arith.mulf %221, %45 : vector<2x256xf32>
      %cst_80 = arith.constant -0.189234793 : f32
      %223 = vector.broadcast %cst_80 : f32 to vector<2x256xf32>
      %224 = arith.mulf %223, %46 : vector<2x256xf32>
      %225 = arith.addf %222, %224 : vector<2x256xf32>
      %226 = arith.addf %220, %225 : vector<2x256xf32>
      %cst_81 = arith.constant -0.0225978382 : f32
      %227 = vector.broadcast %cst_81 : f32 to vector<2x256xf32>
      %228 = arith.mulf %227, %51 : vector<2x256xf32>
      %cst_82 = arith.constant 0.09769243 : f32
      %229 = vector.broadcast %cst_82 : f32 to vector<2x256xf32>
      %230 = arith.mulf %229, %52 : vector<2x256xf32>
      %231 = arith.addf %228, %230 : vector<2x256xf32>
      %232 = arith.addf %226, %231 : vector<2x256xf32>
      %cst_83 = arith.constant 0.0659983307 : f32
      %233 = vector.broadcast %cst_83 : f32 to vector<2x256xf32>
      %234 = arith.mulf %233, %57 : vector<2x256xf32>
      %cst_84 = arith.constant 0.0531829409 : f32
      %235 = vector.broadcast %cst_84 : f32 to vector<2x256xf32>
      %236 = arith.mulf %235, %58 : vector<2x256xf32>
      %237 = arith.addf %234, %236 : vector<2x256xf32>
      %238 = arith.addf %232, %237 : vector<2x256xf32>
      %c3_85 = arith.constant 3 : index
      %c0_86 = arith.constant 0 : index
      %239 = vector.load %arg6[%c3_85, %c0_86] : memref<7x256xf32, #tpu.memory_space<vmem>>, vector<1x256xf32>
      %240 = vector.broadcast %239 : vector<1x256xf32> to vector<2x256xf32>
      %241 = arith.mulf %240, %238 : vector<2x256xf32>
      %242 = arith.addf %197, %241 : vector<2x256xf32>
      %cst_87 = arith.constant -0.119619921 : f32
      %243 = vector.broadcast %cst_87 : f32 to vector<2x256xf32>
      %244 = arith.mulf %243, %22 : vector<2x256xf32>
      %cst_88 = arith.constant -9.55308613E-4 : f32
      %245 = vector.broadcast %cst_88 : f32 to vector<2x256xf32>
      %246 = arith.mulf %245, %23 : vector<2x256xf32>
      %247 = arith.addf %244, %246 : vector<2x256xf32>
      %cst_89 = arith.constant 0.143048748 : f32
      %248 = vector.broadcast %cst_89 : f32 to vector<2x256xf32>
      %249 = arith.mulf %248, %28 : vector<2x256xf32>
      %cst_90 = arith.constant 0.0544250645 : f32
      %250 = vector.broadcast %cst_90 : f32 to vector<2x256xf32>
      %251 = arith.mulf %250, %29 : vector<2x256xf32>
      %252 = arith.addf %249, %251 : vector<2x256xf32>
      %253 = arith.addf %247, %252 : vector<2x256xf32>
      %cst_91 = arith.constant -0.0374809653 : f32
      %254 = vector.broadcast %cst_91 : f32 to vector<2x256xf32>
      %255 = arith.mulf %254, %34 : vector<2x256xf32>
      %cst_92 = arith.constant 0.0593722276 : f32
      %256 = vector.broadcast %cst_92 : f32 to vector<2x256xf32>
      %257 = arith.mulf %256, %35 : vector<2x256xf32>
      %258 = arith.addf %255, %257 : vector<2x256xf32>
      %259 = arith.addf %253, %258 : vector<2x256xf32>
      %cst_93 = arith.constant 0.0661701411 : f32
      %260 = vector.broadcast %cst_93 : f32 to vector<2x256xf32>
      %261 = arith.mulf %260, %39 : vector<2x256xf32>
      %cst_94 = arith.constant 0.00563475443 : f32
      %262 = vector.broadcast %cst_94 : f32 to vector<2x256xf32>
      %263 = arith.mulf %262, %40 : vector<2x256xf32>
      %264 = arith.addf %261, %263 : vector<2x256xf32>
      %265 = arith.addf %259, %264 : vector<2x256xf32>
      %cst_95 = arith.constant -0.077839978 : f32
      %266 = vector.broadcast %cst_95 : f32 to vector<2x256xf32>
      %267 = arith.mulf %266, %45 : vector<2x256xf32>
      %cst_96 = arith.constant -0.123623699 : f32
      %268 = vector.broadcast %cst_96 : f32 to vector<2x256xf32>
      %269 = arith.mulf %268, %46 : vector<2x256xf32>
      %270 = arith.addf %267, %269 : vector<2x256xf32>
      %271 = arith.addf %265, %270 : vector<2x256xf32>
      %cst_97 = arith.constant -0.030224381 : f32
      %272 = vector.broadcast %cst_97 : f32 to vector<2x256xf32>
      %273 = arith.mulf %272, %51 : vector<2x256xf32>
      %cst_98 = arith.constant 0.0101022758 : f32
      %274 = vector.broadcast %cst_98 : f32 to vector<2x256xf32>
      %275 = arith.mulf %274, %52 : vector<2x256xf32>
      %276 = arith.addf %273, %275 : vector<2x256xf32>
      %277 = arith.addf %271, %276 : vector<2x256xf32>
      %cst_99 = arith.constant -0.0629981086 : f32
      %278 = vector.broadcast %cst_99 : f32 to vector<2x256xf32>
      %279 = arith.mulf %278, %57 : vector<2x256xf32>
      %cst_100 = arith.constant 0.0491396151 : f32
      %280 = vector.broadcast %cst_100 : f32 to vector<2x256xf32>
      %281 = arith.mulf %280, %58 : vector<2x256xf32>
      %282 = arith.addf %279, %281 : vector<2x256xf32>
      %283 = arith.addf %277, %282 : vector<2x256xf32>
      %c255_i32 = arith.constant 255 : i32
      %284 = tpu.dynamic_rotate %283 by %c255_i32 dim 1 : vector<2x256xf32>, i32 -> vector<2x256xf32>
      %c4_101 = arith.constant 4 : index
      %c0_102 = arith.constant 0 : index
      %285 = vector.load %arg6[%c4_101, %c0_102] : memref<7x256xf32, #tpu.memory_space<vmem>>, vector<1x256xf32>
      %286 = vector.broadcast %285 : vector<1x256xf32> to vector<2x256xf32>
      %287 = arith.mulf %286, %284 : vector<2x256xf32>
      %288 = arith.addf %242, %287 : vector<2x256xf32>
      %cst_103 = arith.constant -0.027712943 : f32
      %289 = vector.broadcast %cst_103 : f32 to vector<2x256xf32>
      %290 = arith.mulf %289, %22 : vector<2x256xf32>
      %cst_104 = arith.constant -0.0551221296 : f32
      %291 = vector.broadcast %cst_104 : f32 to vector<2x256xf32>
      %292 = arith.mulf %291, %23 : vector<2x256xf32>
      %293 = arith.addf %290, %292 : vector<2x256xf32>
      %cst_105 = arith.constant 0.119711898 : f32
      %294 = vector.broadcast %cst_105 : f32 to vector<2x256xf32>
      %295 = arith.mulf %294, %28 : vector<2x256xf32>
      %cst_106 = arith.constant -0.0311533026 : f32
      %296 = vector.broadcast %cst_106 : f32 to vector<2x256xf32>
      %297 = arith.mulf %296, %29 : vector<2x256xf32>
      %298 = arith.addf %295, %297 : vector<2x256xf32>
      %299 = arith.addf %293, %298 : vector<2x256xf32>
      %cst_107 = arith.constant -0.1025583 : f32
      %300 = vector.broadcast %cst_107 : f32 to vector<2x256xf32>
      %301 = arith.mulf %300, %34 : vector<2x256xf32>
      %cst_108 = arith.constant -0.00683130044 : f32
      %302 = vector.broadcast %cst_108 : f32 to vector<2x256xf32>
      %303 = arith.mulf %302, %35 : vector<2x256xf32>
      %304 = arith.addf %301, %303 : vector<2x256xf32>
      %305 = arith.addf %299, %304 : vector<2x256xf32>
      %cst_109 = arith.constant -0.044326622 : f32
      %306 = vector.broadcast %cst_109 : f32 to vector<2x256xf32>
      %307 = arith.mulf %306, %39 : vector<2x256xf32>
      %cst_110 = arith.constant 0.0184497908 : f32
      %308 = vector.broadcast %cst_110 : f32 to vector<2x256xf32>
      %309 = arith.mulf %308, %40 : vector<2x256xf32>
      %310 = arith.addf %307, %309 : vector<2x256xf32>
      %311 = arith.addf %305, %310 : vector<2x256xf32>
      %cst_111 = arith.constant 0.105975337 : f32
      %312 = vector.broadcast %cst_111 : f32 to vector<2x256xf32>
      %313 = arith.mulf %312, %45 : vector<2x256xf32>
      %cst_112 = arith.constant -2.8984042E-4 : f32
      %314 = vector.broadcast %cst_112 : f32 to vector<2x256xf32>
      %315 = arith.mulf %314, %46 : vector<2x256xf32>
      %316 = arith.addf %313, %315 : vector<2x256xf32>
      %317 = arith.addf %311, %316 : vector<2x256xf32>
      %cst_113 = arith.constant 0.0809763446 : f32
      %318 = vector.broadcast %cst_113 : f32 to vector<2x256xf32>
      %319 = arith.mulf %318, %51 : vector<2x256xf32>
      %cst_114 = arith.constant -0.109692879 : f32
      %320 = vector.broadcast %cst_114 : f32 to vector<2x256xf32>
      %321 = arith.mulf %320, %52 : vector<2x256xf32>
      %322 = arith.addf %319, %321 : vector<2x256xf32>
      %323 = arith.addf %317, %322 : vector<2x256xf32>
      %cst_115 = arith.constant -0.0889391899 : f32
      %324 = vector.broadcast %cst_115 : f32 to vector<2x256xf32>
      %325 = arith.mulf %324, %57 : vector<2x256xf32>
      %cst_116 = arith.constant -0.056444034 : f32
      %326 = vector.broadcast %cst_116 : f32 to vector<2x256xf32>
      %327 = arith.mulf %326, %58 : vector<2x256xf32>
      %328 = arith.addf %325, %327 : vector<2x256xf32>
      %329 = arith.addf %323, %328 : vector<2x256xf32>
      %c254_i32 = arith.constant 254 : i32
      %330 = tpu.dynamic_rotate %329 by %c254_i32 dim 1 : vector<2x256xf32>, i32 -> vector<2x256xf32>
      %c5_117 = arith.constant 5 : index
      %c0_118 = arith.constant 0 : index
      %331 = vector.load %arg6[%c5_117, %c0_118] : memref<7x256xf32, #tpu.memory_space<vmem>>, vector<1x256xf32>
      %332 = vector.broadcast %331 : vector<1x256xf32> to vector<2x256xf32>
      %333 = arith.mulf %332, %330 : vector<2x256xf32>
      %334 = arith.addf %288, %333 : vector<2x256xf32>
      %cst_119 = arith.constant 0.0573064573 : f32
      %335 = vector.broadcast %cst_119 : f32 to vector<2x256xf32>
      %336 = arith.mulf %335, %22 : vector<2x256xf32>
      %cst_120 = arith.constant 0.137198567 : f32
      %337 = vector.broadcast %cst_120 : f32 to vector<2x256xf32>
      %338 = arith.mulf %337, %23 : vector<2x256xf32>
      %339 = arith.addf %336, %338 : vector<2x256xf32>
      %cst_121 = arith.constant -0.072459951 : f32
      %340 = vector.broadcast %cst_121 : f32 to vector<2x256xf32>
      %341 = arith.mulf %340, %28 : vector<2x256xf32>
      %cst_122 = arith.constant -0.048027575 : f32
      %342 = vector.broadcast %cst_122 : f32 to vector<2x256xf32>
      %343 = arith.mulf %342, %29 : vector<2x256xf32>
      %344 = arith.addf %341, %343 : vector<2x256xf32>
      %345 = arith.addf %339, %344 : vector<2x256xf32>
      %cst_123 = arith.constant -0.0860735625 : f32
      %346 = vector.broadcast %cst_123 : f32 to vector<2x256xf32>
      %347 = arith.mulf %346, %34 : vector<2x256xf32>
      %cst_124 = arith.constant -0.00550042465 : f32
      %348 = vector.broadcast %cst_124 : f32 to vector<2x256xf32>
      %349 = arith.mulf %348, %35 : vector<2x256xf32>
      %350 = arith.addf %347, %349 : vector<2x256xf32>
      %351 = arith.addf %345, %350 : vector<2x256xf32>
      %cst_125 = arith.constant -0.119731702 : f32
      %352 = vector.broadcast %cst_125 : f32 to vector<2x256xf32>
      %353 = arith.mulf %352, %39 : vector<2x256xf32>
      %cst_126 = arith.constant 0.0372872427 : f32
      %354 = vector.broadcast %cst_126 : f32 to vector<2x256xf32>
      %355 = arith.mulf %354, %40 : vector<2x256xf32>
      %356 = arith.addf %353, %355 : vector<2x256xf32>
      %357 = arith.addf %351, %356 : vector<2x256xf32>
      %cst_127 = arith.constant -0.211904183 : f32
      %358 = vector.broadcast %cst_127 : f32 to vector<2x256xf32>
      %359 = arith.mulf %358, %45 : vector<2x256xf32>
      %cst_128 = arith.constant -0.0218335502 : f32
      %360 = vector.broadcast %cst_128 : f32 to vector<2x256xf32>
      %361 = arith.mulf %360, %46 : vector<2x256xf32>
      %362 = arith.addf %359, %361 : vector<2x256xf32>
      %363 = arith.addf %357, %362 : vector<2x256xf32>
      %cst_129 = arith.constant 0.0534839444 : f32
      %364 = vector.broadcast %cst_129 : f32 to vector<2x256xf32>
      %365 = arith.mulf %364, %51 : vector<2x256xf32>
      %cst_130 = arith.constant -0.152104914 : f32
      %366 = vector.broadcast %cst_130 : f32 to vector<2x256xf32>
      %367 = arith.mulf %366, %52 : vector<2x256xf32>
      %368 = arith.addf %365, %367 : vector<2x256xf32>
      %369 = arith.addf %363, %368 : vector<2x256xf32>
      %cst_131 = arith.constant 0.0396304503 : f32
      %370 = vector.broadcast %cst_131 : f32 to vector<2x256xf32>
      %371 = arith.mulf %370, %57 : vector<2x256xf32>
      %cst_132 = arith.constant -0.0114389053 : f32
      %372 = vector.broadcast %cst_132 : f32 to vector<2x256xf32>
      %373 = arith.mulf %372, %58 : vector<2x256xf32>
      %374 = arith.addf %371, %373 : vector<2x256xf32>
      %375 = arith.addf %369, %374 : vector<2x256xf32>
      %c253_i32 = arith.constant 253 : i32
      %376 = tpu.dynamic_rotate %375 by %c253_i32 dim 1 : vector<2x256xf32>, i32 -> vector<2x256xf32>
      %c6_133 = arith.constant 6 : index
      %c0_134 = arith.constant 0 : index
      %377 = vector.load %arg6[%c6_133, %c0_134] : memref<7x256xf32, #tpu.memory_space<vmem>>, vector<1x256xf32>
      %378 = vector.broadcast %377 : vector<1x256xf32> to vector<2x256xf32>
      %379 = arith.mulf %378, %376 : vector<2x256xf32>
      %380 = arith.addf %334, %379 : vector<2x256xf32>
      %381 = arith.negf %380 : vector<2x256xf32>
      %382 = math.exp %381 : vector<2x256xf32>
      %cst_135 = arith.constant 1.000000e+00 : f32
      %383 = vector.broadcast %cst_135 : f32 to vector<2x256xf32>
      %384 = arith.addf %383, %382 : vector<2x256xf32>
      %385 = arith.divf %383, %384 : vector<2x256xf32>
      %386 = arith.mulf %380, %385 : vector<2x256xf32>
      %387 = arith.negf %386 : vector<2x256xf32>
      %388 = math.exp %387 : vector<2x256xf32>
      %cst_136 = arith.constant 1.000000e+00 : f32
      %389 = vector.broadcast %cst_136 : f32 to vector<2x256xf32>
      %390 = arith.addf %389, %388 : vector<2x256xf32>
      %391 = arith.divf %389, %390 : vector<2x256xf32>
      %c0_137 = arith.constant 0 : index
      %c0_138 = arith.constant 0 : index
      %392 = vector.load %arg2[%c0_137, %c0_138] : memref<64x256xf32, #tpu.memory_space<vmem>>, vector<64x256xf32>
      %393 = vector.shape_cast %392 : vector<64x256xf32> to vector<2x32x256xf32>
      %394 = vector.shape_cast %391 : vector<2x256xf32> to vector<2x1x256xf32>
      %395 = vector.broadcast %394 : vector<2x1x256xf32> to vector<2x32x256xf32>
      %396 = arith.mulf %12, %395 : vector<2x32x256xf32>
      %397 = arith.addf %396, %393 : vector<2x32x256xf32>
      %398 = vector.shape_cast %397 : vector<2x32x256xf32> to vector<64x256xf32>
      %c0_139 = arith.constant 0 : index
      %c0_140 = arith.constant 0 : index
      %399 = vector.load %arg7[%c0_139, %c0_140] : memref<64x256xf32, #tpu.memory_space<vmem>>, vector<64x256xf32>
      tpu.vector_store %arg7[%c0_139, %c0_140], %398 {strides = array<i32>} : memref<64x256xf32, #tpu.memory_space<vmem>>, vector<64x256xf32>,
    } else {
    }
    return
  }
  func.func @transform_0(%arg0: i32, %arg1: i32) -> (i32, i32) {
    %c0_i32 = arith.constant 0 : i32
    %c0_i32_0 = arith.constant 0 : i32
    return %arg0, %c0_i32 : i32, i32
  }
  func.func @transform_1(%arg0: i32, %arg1: i32) -> (i32, i32, i32) {
    %c0_i32 = arith.constant 0 : i32
    %c0_i32_0 = arith.constant 0 : i32
    %c0_i32_1 = arith.constant 0 : i32
    return %c0_i32, %c0_i32_0, %arg1 : i32, i32, i32
  }
  func.func @transform_2(%arg0: i32, %arg1: i32) -> (i32, i32) {
    %c0_i32 = arith.constant 0 : i32
    %c0_i32_0 = arith.constant 0 : i32
    return %arg0, %c0_i32 : i32, i32
  }
  func.func @transform_3(%arg0: i32, %arg1: i32) -> (i32, i32) {
    %c0_i32 = arith.constant 0 : i32
    %c0_i32_0 = arith.constant 0 : i32
    %c0_i32_1 = arith.constant 0 : i32
    return %c0_i32, %c0_i32_0 : i32, i32
  }
  func.func @transform_4(%arg0: i32, %arg1: i32) -> (i32, i32) {
    %c0_i32 = arith.constant 0 : i32
    %c0_i32_0 = arith.constant 0 : i32
    %c0_i32_1 = arith.constant 0 : i32
    return %c0_i32, %c0_i32_0 : i32, i32
  }
  func.func @transform_5(%arg0: i32, %arg1: i32) -> (i32, i32) {
    %c0_i32 = arith.constant 0 : i32
    %c0_i32_0 = arith.constant 0 : i32
    return %arg0, %c0_i32 : i32, i32
  }
}

</mosaic_0001>

<bundles_post_ra>
// kernel: tpu_custom_call.1
= control target key start
LH: loop header
LB: loop body
LE: loop exit
PB: predicated region body
PF: predicated region fallthrough
CT: control target
= control target key end

     0   :  { %10 = vsyncpa [#allocation4], 0  ;;  %s2486_s0 = inlined_call_operand.hbm [shape: f32[64,256], index: 0, kind: input, shape index: {}]   ;;  %s2487_s1 = inlined_call_operand.hbm [shape: f32[1,256,256], index: 1, kind: input, shape index: {}]   ;;  %s2488_s2 = inlined_call_operand.vmem [shape: f32[64,1], index: 2, kind: input, shape index: {}]   ;;  %s2489_s3 = inlined_call_operand.vmem [shape: f32[7,256], index: 3, kind: input, shape index: {}]   ;;  %s2490_s4 = inlined_call_operand.vmem [shape: f32[7,256], index: 4, kind: input, shape index: {}]   ;;  %s2491_s5 = inlined_call_operand.hbm [shape: f32[64,256], index: 5, kind: output, shape index: {}]  }
   0x1   :  { %11 = vsyncpa [#allocation7], 0 }
   0x2   :  { %12 = vsyncpa [#allocation5], 0  ;;  %s1793_s18 = smov [#allocation3]   ;;  %s1721_s22 = scalar_lea.hbm %s2486_s0, 2048 }
   0x3   :  { %s18_s19 = sshll.u32 %s1793_s18, 4  ;;  %p1722_p0 = scmp.ne.s32.totalorder %s2486_s0, %s1721_s22  ;;  %s19_s19 = int_to_ptr.vmem [resolvable:$true] %s18_s19 }
   0x4   :  { %p1725_p1 = scmp.lt.u32.totalorder %s1721_s22, %s2486_s0 }
   0x6   :  { %p1727_p2 = pnand %p1725_p1, %p1722_p0 }
   0x8   :  { %1730 = shalt.err (!%p1727_p2)
}
   0x9   :  { %s1731_s27 = scalar_lea.vmem %s19_s19, 2048  ;;  %p1736_p4 = scmp.lt.s32.totalorder %s19_s19, %s19_s19 }
   0xa   :  { %p1732_p3 = scmp.ne.s32.totalorder %s19_s19, %s1731_s27  ;;  %p1737_p5 = scmp.lt.s32.totalorder %s1731_s27, %s1731_s27 }
   0xc   :  { %p1738_p6 = por %p1737_p5, %p1736_p4 }
   0xe   :  { %p1739_p7 = pnand %p1738_p6, %p1732_p3 }
  0x10   :  { %1742 = shalt.err (!%p1739_p7)
}
  0x11   :  { %s1794_s28 = smov 256   ;;  %s1795_s29 = smov 16  }
  0x12   :  { %24 = dma.hbm_to_vmem [thread:$0]  %s2486_s0, 2048, %s19_s19, [#allocation4], %s1794_s28, %s1794_s28, %s1795_s29  }
  0x13   :  { %s1796_s7 = smov [#allocation6]   ;;  %s1743_s11 = scalar_lea.hbm %s2487_s1, 8192 }
  0x14   :  { %s30_s8 = sshll.u32 %s1796_s7, 4  ;;  %p1744_p8 = scmp.ne.s32.totalorder %s2487_s1, %s1743_s11  ;;  %s31_s8 = int_to_ptr.vmem [resolvable:$true] %s30_s8 }
  0x15   :  { %p1747_p9 = scmp.lt.u32.totalorder %s1743_s11, %s2487_s1 }
  0x17   :  { %p1749_p10 = pnand %p1747_p9, %p1744_p8 }
  0x19   :  { %1752 = shalt.err (!%p1749_p10)
}
  0x1a   :  { %s1753_s16 = scalar_lea.vmem %s31_s8, 8192  ;;  %p1758_p12 = scmp.lt.s32.totalorder %s31_s8, %s31_s8 }
  0x1b   :  { %p1754_p11 = scmp.ne.s32.totalorder %s31_s8, %s1753_s16  ;;  %p1759_p13 = scmp.lt.s32.totalorder %s1753_s16, %s1753_s16 }
  0x1d   :  { %p1760_p0 = por %p1759_p13, %p1758_p12 }
  0x1f   :  { %p1761_p1 = pnand %p1760_p0, %p1754_p11 }
  0x21   :  { %1764 = shalt.err (!%p1761_p1)
}
  0x22   :  { %36 = dma.hbm_to_vmem [thread:$0]  %s2487_s1, 8192, %s31_s8, [#allocation7], %s1794_s28, %s1794_s28, %s1795_s29  }
  0x23   :  { %1787 = dma.done.wait [#allocation4], 2048  }
  0x24   :  { %1788 = vsyncadd [#allocation4], 4294965248 }
  0x25   :  { %1789 = dma.done.wait [#allocation7], 8192  }
  0x26   :  { %1790 = vsyncadd [#allocation7], 4294959104  ;;  %v1797_v0 = vmov 0   ;;  %v74_v1 = vld [vmem:[#allocation6 + $0x8] sm:$0xff]  ;;  %v76_v2 = vld [vmem:[#allocation6 + $0x18] sm:$0xff]  ;;  %vm423_vm0 = vcmask 1041409  }
  0x27   :  { %1704 = vset.pattern.permute.xlu1 %v1797_v0  ;;  %1703 = vset.pattern.permute.xlu0 %v1797_v0  ;;  %v73_v3 = vld [vmem:[#allocation6] sm:$0xff]  ;;  %v1589_v4 = vpack.c.bf16 %v76_v2, %v74_v1  ;;  %v75_v5 = vld [vmem:[#allocation6 + $0x10] sm:$0xff]  ;;  %v78_v6 = vld [vmem:[#allocation6 + $0x28] sm:$0xff]  ;;  %vm432_vm1 = vcmask 1043459   ;;  %vm437_vm2 = vcmask 1041408   ;;  %s1799_s12 = smov 32  }
  0x28   :  { %v80_v7 = vld [vmem:[#allocation6 + $0x38] sm:$0xff]  ;;  %v1591_v8 = vpack.c.bf16 %v75_v5, %v73_v3  ;;  %v77_v10 = vld [vmem:[#allocation6 + $0x20] sm:$0xff]  ;;  %v79_v11 = vld [vmem:[#allocation6 + $0x30] sm:$0xff]  ;;  %s1800_s13 = smov 112   ;;  %s1801_s14 = smov 96  }
  0x29   :  { %v1593_v9 = vpack.c.bf16 %v80_v7, %v78_v6  ;;  %v82_v12 = vld [vmem:[#allocation6 + $0x48] sm:$0xff]  ;;  %1590 = vmatprep.subr.bf16.mxu0 %v1589_v4  ;;  %1653 = vmatprep.subr.bf16.mxu1 %v1589_v4  ;;  %v84_v13 = vld [vmem:[#allocation6 + $0x58] sm:$0xff]  ;;  %v1595_v14 = vpack.c.bf16 %v79_v11, %v77_v10  ;;  %v81_v16 = vld [vmem:[#allocation6 + $0x40] sm:$0xff]  ;;  %s1802_s15 = smov 80   ;;  %s1804_s26 = smov 2  }
  0x2a   :  { %1592 = vmatpush1.bf16.msra.mxu0 %v1591_v8  ;;  %1669 = vmatpush1.bf16.msra.mxu1 %v1591_v8  ;;  %v1597_v15 = vpack.c.bf16 %v84_v13, %v82_v12  ;;  %v83_v17 = vld [vmem:[#allocation6 + $0x50] sm:$0xff]  ;;  %v86_v18 = vld [vmem:[#allocation6 + $0x68] sm:$0xff]  ;;  %v88_v19 = vld [vmem:[#allocation6 + $0x78] sm:$0xff]  ;;  %s1805_s27 = smov 1   ;;  %s1806_s30 = smov 127  }
  0x2b   :  { %1594 = vmatprep.subr.bf16.mxu0 %v1593_v9  ;;  %1654 = vmatprep.subr.bf16.mxu1 %v1593_v9  ;;  %v1599_v20 = vpack.c.bf16 %v83_v17, %v81_v16  ;;  %v1601_v21 = vpack.c.bf16 %v88_v19, %v86_v18  ;;  %v85_v22 = vld [vmem:[#allocation6 + $0x60] sm:$0xff]  ;;  %v87_v23 = vld [vmem:[#allocation6 + $0x70] sm:$0xff]  ;;  %v90_v24 = vld [vmem:[#allocation6 + $0x88] sm:$0xff]  ;;  %s1807_s6 = smov 126   ;;  %s1808_s7 = smov 125  }
  0x2c   :  { %v92_v25 = vld [vmem:[#allocation6 + $0x98] sm:$0xff]  ;;  %v1603_v26 = vpack.c.bf16 %v87_v23, %v85_v22  ;;  %v89_v28 = vld [vmem:[#allocation6 + $0x80] sm:$0xff]  ;;  %v91_v29 = vld [vmem:[#allocation6 + $0x90] sm:$0xff] }
  0x2d   :  { %v1605_v27 = vpack.c.bf16 %v92_v25, %v90_v24  ;;  %v94_v30 = vld [vmem:[#allocation6 + $0xa8] sm:$0xff]  ;;  %v96_v31 = vld [vmem:[#allocation6 + $0xb8] sm:$0xff]  ;;  %v1607_v32 = vpack.c.bf16 %v91_v29, %v89_v28  ;;  %v93_v34 = vld [vmem:[#allocation6 + $0xa0] sm:$0xff] }
  0x2e   :  { %1596 = vmatpush1.bf16.msra.mxu0 %v1595_v14  ;;  %1670 = vmatpush1.bf16.msra.mxu1 %v1595_v14  ;;  %v1609_v33 = vpack.c.bf16 %v96_v31, %v94_v30  ;;  %v95_v35 = vld [vmem:[#allocation6 + $0xb0] sm:$0xff]  ;;  %v98_v36 = vld [vmem:[#allocation6 + $0xc8] sm:$0xff]  ;;  %v100_v37 = vld [vmem:[#allocation6 + $0xd8] sm:$0xff] }
  0x2f   :  { %1598 = vmatprep.subr.bf16.mxu0 %v1597_v15  ;;  %1655 = vmatprep.subr.bf16.mxu1 %v1597_v15  ;;  %v1611_v38 = vpack.c.bf16 %v95_v35, %v93_v34  ;;  %v97_v39 = vld [vmem:[#allocation6 + $0xc0] sm:$0xff]  ;;  %v1613_v40 = vpack.c.bf16 %v100_v37, %v98_v36  ;;  %v99_v41 = vld [vmem:[#allocation6 + $0xd0] sm:$0xff]  ;;  %v58_v42 = vld [vmem:[#allocation3 + $0x8] sm:$0xff] }
  0x30   :  { %v66_v43 = vld [vmem:[#allocation3 + $0x48] sm:$0xff]  ;;  %v104_v45 = vld [vmem:[#allocation6 + $0xf8] sm:$0xff]  ;;  %201 = vmatprep.mubr.f32.mxu0 %v58_v42  ;;  %v1615_v46 = vpack.c.bf16 %v99_v41, %v97_v39  ;;  %v101_v48 = vld [vmem:[#allocation6 + $0xe0] sm:$0xff] }
  0x31   :  { %v102_v44 = vld [vmem:[#allocation6 + $0xe8] sm:$0xff]  ;;  %225 = vmatprep.mubr.f32.mxu1 %v66_v43  ;;  %v103_v49 = vld [vmem:[#allocation6 + $0xf0] sm:$0xff]  ;;  %v108_v51 = vld [vmem:[#allocation6 + $0x118] sm:$0xff] }
  0x32   :  { %1600 = vmatpush1.bf16.msra.mxu0 %v1599_v20  ;;  %1671 = vmatpush1.bf16.msra.mxu1 %v1599_v20  ;;  %v1617_v47 = vpack.c.bf16 %v104_v45, %v102_v44  ;;  %v106_v50 = vld [vmem:[#allocation6 + $0x108] sm:$0xff]  ;;  %v53_v52 = vld [vmem:[%s2488_s2 + $0x20] sm:$0xff]  ;;  %v1619_v54 = vpack.c.bf16 %v103_v49, %v101_v48  ;;  %v107_v58 = vld [vmem:[#allocation6 + $0x110] sm:$0xff] }
  0x33   :  { %1602 = vmatprep.subr.bf16.mxu0 %v1601_v21  ;;  %1656 = vmatprep.subr.bf16.mxu1 %v1601_v21  ;;  %v49_v53 = vld [vmem:[%s2488_s2] sm:$0xff]  ;;  %v54_v55 = vld [vmem:[%s2488_s2 + $0x28] sm:$0xff]  ;;  %v1621_v56 = vpack.c.bf16 %v108_v51, %v106_v50  ;;  %v112_v60 = vld [vmem:[#allocation6 + $0x138] sm:$0xff] }
  0x34   :  { %272 = vperm.xlu1 %1704, %v53_v52   ;;  %v105_v57 = vld [vmem:[#allocation6 + $0x100] sm:$0xff]  ;;  %v110_v59 = vld [vmem:[#allocation6 + $0x128] sm:$0xff]  ;;  %252 = vperm.xlu0 %1703, %v49_v53   ;;  %v55_v63 = vld [vmem:[%s2488_s2 + $0x30] sm:$0xff] }
  0x35   :  { %v50_v61 = vld [vmem:[%s2488_s2 + $0x8] sm:$0xff]  ;;  %v1623_v62 = vpack.c.bf16 %v107_v58, %v105_v57  ;;  %v1625_v0 = vpack.c.bf16 %v112_v60, %v110_v59  ;;  %v109_v1 = vld [vmem:[#allocation6 + $0x120] sm:$0xff]  ;;  %v111_v2 = vld [vmem:[#allocation6 + $0x130] sm:$0xff] }
  0x36   :  { %1604 = vmatpush1.bf16.msra.mxu0 %v1603_v26  ;;  %1672 = vmatpush1.bf16.msra.mxu1 %v1603_v26  ;;  %v114_v3 = vld [vmem:[#allocation6 + $0x148] sm:$0xff]  ;;  %v116_v4 = vld [vmem:[#allocation6 + $0x158] sm:$0xff]  ;;  %v51_v5 = vld [vmem:[%s2488_s2 + $0x10] sm:$0xff]  ;;  %v1627_v6 = vpack.c.bf16 %v111_v2, %v109_v1 }
  0x37   :  { %1606 = vmatprep.subr.bf16.mxu0 %v1605_v27  ;;  %1657 = vmatprep.subr.bf16.mxu1 %v1605_v27  ;;  %v56_v7 = vld [vmem:[%s2488_s2 + $0x38] sm:$0xff]  ;;  %v1629_v8 = vpack.c.bf16 %v116_v4, %v114_v3  ;;  %v113_v9 = vld [vmem:[#allocation6 + $0x140] sm:$0xff]  ;;  %v115_v10 = vld [vmem:[#allocation6 + $0x150] sm:$0xff] }
  0x38   :  { %277 = vperm.xlu1 %1704, %v54_v55   ;;  %257 = vperm.xlu0 %1703, %v50_v61   ;;  %v118_v11 = vld [vmem:[#allocation6 + $0x168] sm:$0xff]  ;;  %v120_v12 = vld [vmem:[#allocation6 + $0x178] sm:$0xff]  ;;  %v1631_v14 = vpack.c.bf16 %v115_v10, %v113_v9  ;;  %v117_v16 = vld [vmem:[#allocation6 + $0x160] sm:$0xff] }
  0x39   :  { %v52_v13 = vld [vmem:[%s2488_s2 + $0x18] sm:$0xff]  ;;  %v1633_v15 = vpack.c.bf16 %v120_v12, %v118_v11  ;;  %v119_v17 = vld [vmem:[#allocation6 + $0x170] sm:$0xff]  ;;  %v122_v18 = vld [vmem:[#allocation6 + $0x188] sm:$0xff]  ;;  %s1798_s2 = smov 48  }
  0x3a   :  { %1608 = vmatpush1.bf16.msra.mxu0 %v1607_v32  ;;  %1673 = vmatpush1.bf16.msra.mxu1 %v1607_v32  ;;  %v124_v19 = vld [vmem:[#allocation6 + $0x198] sm:$0xff]  ;;  %v1635_v20 = vpack.c.bf16 %v119_v17, %v117_v16  ;;  %v121_v22 = vld [vmem:[#allocation6 + $0x180] sm:$0xff]  ;;  %v123_v23 = vld [vmem:[#allocation6 + $0x190] sm:$0xff]  ;;  %v444_v17 = vlaneseq }
  0x3b   :  { %1610 = vmatprep.subr.bf16.mxu0 %v1609_v33  ;;  %1658 = vmatprep.subr.bf16.mxu1 %v1609_v33  ;;  %v1637_v21 = vpack.c.bf16 %v124_v19, %v122_v18  ;;  %v126_v24 = vld [vmem:[#allocation6 + $0x1a8] sm:$0xff]  ;;  %v128_v25 = vld [vmem:[#allocation6 + $0x1b8] sm:$0xff]  ;;  %v1639_v26 = vpack.c.bf16 %v123_v23, %v121_v22  ;;  %v125_v28 = vld [vmem:[#allocation6 + $0x1a0] sm:$0xff] }
  0x3c   :  { %282 = vperm.xlu1 %1704, %v55_v63   ;;  %262 = vperm.xlu0 %1703, %v51_v5   ;;  %v1641_v27 = vpack.c.bf16 %v128_v25, %v126_v24  ;;  %v127_v29 = vld [vmem:[#allocation6 + $0x1b0] sm:$0xff]  ;;  %v130_v30 = vld [vmem:[#allocation6 + $0x1c8] sm:$0xff]  ;;  %v132_v31 = vld [vmem:[#allocation6 + $0x1d8] sm:$0xff] }
  0x3d   :  { %v1643_v32 = vpack.c.bf16 %v127_v29, %v125_v28  ;;  %v1645_v33 = vpack.c.bf16 %v132_v31, %v130_v30  ;;  %v129_v34 = vld [vmem:[#allocation6 + $0x1c0] sm:$0xff]  ;;  %v131_v35 = vld [vmem:[#allocation6 + $0x1d0] sm:$0xff]  ;;  %v134_v36 = vld [vmem:[#allocation6 + $0x1e8] sm:$0xff] }
  0x3e   :  { %1612 = vmatpush1.bf16.msra.mxu0 %v1611_v38  ;;  %1674 = vmatpush1.bf16.msra.mxu1 %v1611_v38  ;;  %v136_v37 = vld [vmem:[#allocation6 + $0x1f8] sm:$0xff]  ;;  %v1647_v38 = vpack.c.bf16 %v131_v35, %v129_v34  ;;  %v135_v41 = vld [vmem:[#allocation6 + $0x1f0] sm:$0xff]  ;;  %v57_v43 = vld [vmem:[#allocation3] sm:$0xff] }
  0x3f   :  { %1614 = vmatprep.subr.bf16.mxu0 %v1613_v40  ;;  %1659 = vmatprep.subr.bf16.mxu1 %v1613_v40  ;;  %v1649_v39 = vpack.c.bf16 %v136_v37, %v134_v36  ;;  %v133_v40 = vld [vmem:[#allocation6 + $0x1e0] sm:$0xff]  ;;  %v60_v45 = vld [vmem:[#allocation3 + $0x18] sm:$0xff]  ;;  %v67_v48 = vld [vmem:[#allocation3 + $0x50] sm:$0xff] }
  0x40   :  { %287 = vperm.xlu1 %1704, %v56_v7   ;;  %267 = vperm.xlu0 %1703, %v52_v13   ;;  %v1651_v42 = vpack.c.bf16 %v135_v41, %v133_v40  ;;  %v65_v44 = vld [vmem:[#allocation3 + $0x40] sm:$0xff]  ;;  %v62_v49 = vld [vmem:[#allocation3 + $0x28] sm:$0xff]  ;;  %v64_v53 = vld [vmem:[#allocation3 + $0x38] sm:$0xff] }
  0x41   :  { %v70_v50 = vld [vmem:[#allocation3 + $0x68] sm:$0xff]  ;;  %v61_v51 = vld [vmem:[#allocation3 + $0x20] sm:$0xff]  ;;  %v63_v55 = vld [vmem:[#allocation3 + $0x30] sm:$0xff] }
  0x42   :  { %1616 = vmatpush1.bf16.msra.mxu0 %v1615_v46  ;;  %1675 = vmatpush1.bf16.msra.mxu1 %v1615_v46  ;;  %v68_v46 = vld [vmem:[#allocation3 + $0x58] sm:$0xff]  ;;  %v69_v52 = vld [vmem:[#allocation3 + $0x60] sm:$0xff] }
  0x43   :  { %1618 = vmatprep.subr.bf16.mxu0 %v1617_v47  ;;  %1660 = vmatprep.subr.bf16.mxu1 %v1617_v47  ;;  %v59_v47 = vld [vmem:[#allocation3 + $0x10] sm:$0xff] }
  0x46   :  { %1620 = vmatpush1.bf16.msra.mxu0 %v1619_v54  ;;  %1676 = vmatpush1.bf16.msra.mxu1 %v1619_v54  ;;  %v72_v54 = vld [vmem:[#allocation3 + $0x78] sm:$0xff] }
  0x47   :  { %1622 = vmatprep.subr.bf16.mxu0 %v1621_v56  ;;  %1661 = vmatprep.subr.bf16.mxu1 %v1621_v56  ;;  %v71_v56 = vld [vmem:[#allocation3 + $0x70] sm:$0xff] }
  0x4a   :  { %1624 = vmatpush1.bf16.msra.mxu0 %v1623_v62  ;;  %1677 = vmatpush1.bf16.msra.mxu1 %v1623_v62 }
  0x4b   :  { %1626 = vmatprep.subr.bf16.mxu0 %v1625_v0  ;;  %1662 = vmatprep.subr.bf16.mxu1 %v1625_v0 }
  0x4e   :  { %1628 = vmatpush1.bf16.msra.mxu0 %v1627_v6  ;;  %1678 = vmatpush1.bf16.msra.mxu1 %v1627_v6 }
  0x4f   :  { %1630 = vmatprep.subr.bf16.mxu0 %v1629_v8  ;;  %1663 = vmatprep.subr.bf16.mxu1 %v1629_v8 }
  0x52   :  { %1632 = vmatpush1.bf16.msra.mxu0 %v1631_v14  ;;  %1679 = vmatpush1.bf16.msra.mxu1 %v1631_v14 }
  0x53   :  { %1634 = vmatprep.subr.bf16.mxu0 %v1633_v15  ;;  %1664 = vmatprep.subr.bf16.mxu1 %v1633_v15 }
  0x56   :  { %1636 = vmatpush1.bf16.msra.mxu0 %v1635_v20  ;;  %1680 = vmatpush1.bf16.msra.mxu1 %v1635_v20 }
  0x57   :  { %1638 = vmatprep.subr.bf16.mxu0 %v1637_v21  ;;  %1665 = vmatprep.subr.bf16.mxu1 %v1637_v21 }
  0x5a   :  { %1640 = vmatpush1.bf16.msra.mxu0 %v1639_v26  ;;  %1681 = vmatpush1.bf16.msra.mxu1 %v1639_v26 }
  0x5b   :  { %1642 = vmatprep.subr.bf16.mxu0 %v1641_v27  ;;  %1666 = vmatprep.subr.bf16.mxu1 %v1641_v27 }
  0x5e   :  { %1644 = vmatpush1.bf16.msra.mxu0 %v1643_v32  ;;  %1682 = vmatpush1.bf16.msra.mxu1 %v1643_v32 }
  0x5f   :  { %1646 = vmatprep.subr.bf16.mxu0 %v1645_v33  ;;  %1667 = vmatprep.subr.bf16.mxu1 %v1645_v33 }
  0x62   :  { %1648 = vmatpush1.bf16.msra.mxu0 %v1647_v38  ;;  %1683 = vmatpush1.bf16.msra.mxu1 %v1647_v38 }
  0x63   :  { %1650 = vmatprep.subr.bf16.mxu0 %v1649_v39  ;;  %1668 = vmatprep.subr.bf16.mxu1 %v1649_v39 }
  0x66   :  { %1652 = vmatpush1.bf16.msra.mxu0 %v1651_v42  ;;  %1684 = vmatpush1.bf16.msra.mxu1 %v1651_v42 }
  0x69   :  { %202 = vmatmul.mubr.f32.vlgmr.msra.gmra.mrb[0].mxu0 %v57_v43  ;;  %226 = vmatmul.mubr.f32.vlgmr.msra.gmra.mrb[0].mxu1 %v65_v44 }
  0x6a   :  { %207 = vmatprep.mubr.f32.mxu0 %v60_v45  ;;  %231 = vmatprep.mubr.f32.mxu1 %v68_v46 }
  0x6d   :  { %208 = vmatmul.mubr.f32.gmra.mrb[2].mxu0 %v59_v47  ;;  %232 = vmatmul.mubr.f32.gmra.mrb[2].mxu1 %v67_v48 }
  0x6e   :  { %213 = vmatprep.mubr.f32.mxu0 %v62_v49  ;;  %237 = vmatprep.mubr.f32.mxu1 %v70_v50 }
  0x71   :  { %214 = vmatmul.mubr.f32.gmra.mrb[4].mxu0 %v61_v51  ;;  %238 = vmatmul.mubr.f32.gmra.mrb[4].mxu1 %v69_v52 }
  0x72   :  { %219 = vmatprep.mubr.f32.mxu0 %v64_v53  ;;  %243 = vmatprep.mubr.f32.mxu1 %v72_v54 }
  0x75   :  { %220 = vmatmul.mubr.f32.gmra.mrb[6].mxu0 %v63_v55  ;;  %244 = vmatmul.mubr.f32.gmra.mrb[6].mxu1 %v71_v56 }
  0xb3   :  { %v273_v57 = vpop.permute.xlu1 %272  ;;  %v253_v58 = vpop.permute.xlu0 %252 }
  0xb7   :  { %v278_v59 = vpop.permute.xlu1 %277  ;;  %v258_v60 = vpop.permute.xlu0 %257 }
  0xbb   :  { %v283_v1 = vpop.permute.xlu1 %282  ;;  %v263_v2 = vpop.permute.xlu0 %262 }
  0xbf   :  { %v288_v28 = vpop.permute.xlu1 %287  ;;  %v268_v29 = vpop.permute.xlu0 %267 }
 0x13c   :  { %v203_v61 = vpop.f32.mrb[0].mxu0  ;;  %v227_v62 = vpop.f32.mrb[0].mxu1 }
 0x13d   :  { %v205_v63 = vpop.f32.mrb[1].mxu0  ;;  %v229_v0 = vpop.f32.mrb[1].mxu1  ;;  %v1899_v9 = vmul.f32 %v253_v58, %v203_v61  ;;  %v1905_v12 = vmul.f32 %v273_v57, %v227_v62 }
 0x13e   :  { %v1907_v13 = vmul.f32 %v253_v58, %v205_v63  ;;  %v1909_v14 = vmul.f32 %v273_v57, %v229_v0 }
 0x13f   :  { %2510 = vst [vmem:[#allocation16_spill] sm:$0xff] %v1905_v12 }
 0x140   :  { %v209_v3 = vpop.f32.mrb[2].mxu0  ;;  %v233_v4 = vpop.f32.mrb[2].mxu1  ;;  %2511 = vst [vmem:[#allocation17_spill] sm:$0xff] %v1909_v14 }
 0x141   :  { %v1895_v5 = vmul.f32 %v258_v60, %v209_v3  ;;  %v211_v6 = vpop.f32.mrb[3].mxu0  ;;  %v235_v7 = vpop.f32.mrb[3].mxu1  ;;  %v1897_v8 = vmul.f32 %v278_v59, %v233_v4 }
 0x142   :  { %v1901_v10 = vmul.f32 %v258_v60, %v211_v6  ;;  %v1903_v11 = vmul.f32 %v278_v59, %v235_v7 }
 0x143   :  { %2506 = vst [vmem:[#allocation12_spill] sm:$0xff] %v1895_v5  ;;  %2507 = vst [vmem:[#allocation13_spill] sm:$0xff] %v1897_v8  ;;  %v342_v18 = vadd.f32 %v1895_v5, %v1899_v9  ;;  %v383_v19 = vmax.f32 %v1899_v9, %v1895_v5  ;;  %v360_v24 = vadd.f32 %v1897_v8, %v1905_v12 }
 0x144   :  { %2508 = vst [vmem:[#allocation14_spill] sm:$0xff] %v1901_v10  ;;  %2509 = vst [vmem:[#allocation15_spill] sm:$0xff] %v1903_v11  ;;  %v215_v15 = vpop.f32.mrb[4].mxu0  ;;  %v239_v16 = vpop.f32.mrb[4].mxu1  ;;  %v401_v25 = vmax.f32 %v1905_v12, %v1897_v8  ;;  %v351_v30 = vadd.f32 %v1901_v10, %v1907_v13  ;;  %v392_v31 = vmax.f32 %v1907_v13, %v1901_v10 }
 0x145   :  { %v1915_v20 = vmul.f32 %v263_v2, %v215_v15  ;;  %v1917_v21 = vmul.f32 %v283_v1, %v239_v16  ;;  %v217_v22 = vpop.f32.mrb[5].mxu0  ;;  %v241_v23 = vpop.f32.mrb[5].mxu1  ;;  %v369_v32 = vadd.f32 %v1903_v11, %v1909_v14  ;;  %v410_v33 = vmax.f32 %v1909_v14, %v1903_v11 }
 0x146   :  { %v1923_v26 = vmul.f32 %v263_v2, %v217_v22  ;;  %v1925_v27 = vmul.f32 %v283_v1, %v241_v23 }
 0x147   :  { %2512 = vst [vmem:[#allocation18_spill] sm:$0xff] %v1915_v20  ;;  %2513 = vst [vmem:[#allocation19_spill] sm:$0xff] %v1917_v21  ;;  %v343_v34 = vadd.f32 %v342_v18, %v1915_v20  ;;  %v384_v35 = vmax.f32 %v383_v19, %v1915_v20  ;;  %v361_v36 = vadd.f32 %v360_v24, %v1917_v21 }
 0x148   :  { %2514 = vst [vmem:[#allocation20_spill] sm:$0xff] %v1923_v26  ;;  %2515 = vst [vmem:[#allocation21_spill] sm:$0xff] %v1925_v27  ;;  %v402_v37 = vmax.f32 %v401_v25, %v1917_v21  ;;  %v221_v38 = vpop.f32.mrb[6].mxu0  ;;  %v245_v39 = vpop.f32.mrb[6].mxu1  ;;  %v352_v40 = vadd.f32 %v351_v30, %v1923_v26  ;;  %v393_v41 = vmax.f32 %v392_v31, %v1923_v26 }
 0x149   :  { %v1941_v42 = vmul.f32 %v268_v29, %v221_v38  ;;  %v1943_v43 = vmul.f32 %v288_v28, %v245_v39  ;;  %v223_v44 = vpop.f32.mrb[7].mxu0  ;;  %v247_v45 = vpop.f32.mrb[7].mxu1  ;;  %v370_v46 = vadd.f32 %v369_v32, %v1925_v27  ;;  %v411_v47 = vmax.f32 %v410_v33, %v1925_v27 }
 0x14a   :  { %v1947_v48 = vmul.f32 %v268_v29, %v223_v44  ;;  %v1949_v49 = vmul.f32 %v288_v28, %v247_v45 }
 0x14b   :  { %2516 = vst [vmem:[#allocation22_spill] sm:$0xff] %v1941_v42  ;;  %2517 = vst [vmem:[#allocation23_spill] sm:$0xff] %v1943_v43  ;;  %v344_v50 = vadd.f32 %v343_v34, %v1941_v42  ;;  %v385_v51 = vmax.f32 %v384_v35, %v1941_v42  ;;  %v362_v52 = vadd.f32 %v361_v36, %v1943_v43 }
 0x14c   :  { %2518 = vst [vmem:[#allocation24_spill] sm:$0xff] %v1947_v48  ;;  %2519 = vst [vmem:[#allocation25_spill] sm:$0xff] %v1949_v49  ;;  %v403_v53 = vmax.f32 %v402_v37, %v1943_v43  ;;  %v353_v54 = vadd.f32 %v352_v40, %v1947_v48  ;;  %v394_v55 = vmax.f32 %v393_v41, %v1947_v48 }
 0x14d   :  { %v371_v56 = vadd.f32 %v370_v46, %v1949_v49  ;;  %v412_v57 = vmax.f32 %v411_v47, %v1949_v49  ;;  %v345_v58 = vrot.slane %v344_v50, 4  ;;  %v386_v59 = vrot.slane %v385_v51, 4 }
 0x14e   :  { %v363_v60 = vrot.slane %v362_v52, 4  ;;  %v404_v61 = vrot.slane %v403_v53, 4  ;;  %v354_v62 = vrot.slane %v353_v54, 4  ;;  %v395_v63 = vrot.slane %v394_v55, 4 }
 0x14f   :  { %v372_v0 = vrot.slane %v371_v56, 4  ;;  %v413_v1 = vrot.slane %v412_v57, 4  ;;  %v346_v2 = vadd.f32 %v345_v58, %v344_v50  ;;  %v387_v3 = vmax.f32 %v385_v51, %v386_v59 }
 0x150   :  { %v364_v4 = vadd.f32 %v363_v60, %v362_v52  ;;  %v405_v6 = vmax.f32 %v403_v53, %v404_v61  ;;  %v355_v7 = vadd.f32 %v354_v62, %v353_v54  ;;  %v396_v15 = vmax.f32 %v394_v55, %v395_v63 }
 0x151   :  { %v373_v16 = vadd.f32 %v372_v0, %v371_v56  ;;  %v414_v18 = vmax.f32 %v412_v57, %v413_v1  ;;  %v347_v19 = vrot.slane %v346_v2, 2  ;;  %v388_v22 = vrot.slane %v387_v3, 2 }
 0x152   :  { %v365_v23 = vrot.slane %v364_v4, 2  ;;  %v406_v24 = vrot.slane %v405_v6, 2  ;;  %v356_v25 = vrot.slane %v355_v7, 2  ;;  %v397_v28 = vrot.slane %v396_v15, 2 }
 0x153   :  { %v374_v29 = vrot.slane %v373_v16, 2  ;;  %v415_v30 = vrot.slane %v414_v18, 2  ;;  %v348_v31 = vadd.f32 %v347_v19, %v346_v2  ;;  %v389_v32 = vmax.f32 %v387_v3, %v388_v22 }
 0x154   :  { %v366_v33 = vadd.f32 %v365_v23, %v364_v4  ;;  %v407_v34 = vmax.f32 %v405_v6, %v406_v24  ;;  %v357_v35 = vadd.f32 %v356_v25, %v355_v7  ;;  %v398_v36 = vmax.f32 %v396_v15, %v397_v28  ;;  %v1575_v15 = vld [vmem:[%s2489_s3 + $0x3] ss:$8 sm:$0x3] }
 0x155   :  { %v375_v37 = vadd.f32 %v374_v29, %v373_v16  ;;  %v416_v38 = vmax.f32 %v414_v18, %v415_v30  ;;  %v349_v39 = vrot.slane %v348_v31, 1  ;;  %v390_v40 = vrot.slane %v389_v32, 1 }
 0x156   :  { %v367_v41 = vrot.slane %v366_v33, 1  ;;  %v408_v44 = vrot.slane %v407_v34, 1  ;;  %v358_v45 = vrot.slane %v357_v35, 1  ;;  %v399_v46 = vrot.slane %v398_v36, 1 }
 0x157   :  { %v376_v47 = vrot.slane %v375_v37, 1  ;;  %v417_v50 = vrot.slane %v416_v38, 1  ;;  %v350_v51 = vadd.f32 %v349_v39, %v348_v31  ;;  %v391_v52 = vmax.f32 %v389_v32, %v390_v40  ;;  %v449_v31 = vld [vmem:[%s2489_s3] ss:$8 sm:$0x3] }
 0x158   :  { %v368_v53 = vadd.f32 %v367_v41, %v366_v33  ;;  %v409_v54 = vmax.f32 %v407_v34, %v408_v44  ;;  %v359_v55 = vadd.f32 %v358_v45, %v357_v35  ;;  %v400_v56 = vmax.f32 %v398_v36, %v399_v46  ;;  %v1996_v32 = vld [vmem:[%s2489_s3 + $0x1] ss:$8 sm:$0x3]  ;;  %v2002_v34 = vld [vmem:[%s2489_s3 + $0x2] ss:$8 sm:$0x3] }
 0x159   :  { %v377_v57 = vadd.f32 %v376_v47, %v375_v37  ;;  %v418_v58 = vmax.f32 %v416_v38, %v417_v50  ;;  %v379_v59 = vmul.f32 0.03125, %v350_v51  ;;  %v1960_v63 = vshrl.u32 %v444_v17, 7  ;;  %v2024_v45 = vld [vmem:[%s2489_s3 + $0x5] ss:$8 sm:$0x3] }
 0x15a   :  { %v381_v60 = vmul.f32 0.03125, %v368_v53  ;;  %v380_v61 = vmul.f32 0.03125, %v359_v55  ;;  %v433_v1 = vsel %vm432_vm1, %v409_v54, %v391_v52  ;;  %v1988_v30 = vand.u32 127, %v444_v17  ;;  %v2008_v17 = vld [vmem:[%s2489_s3 + $0x4] ss:$8 sm:$0x3] }
 0x15b   :  { %v382_v62 = vmul.f32 0.03125, %v377_v57  ;;  %v434_v4 = vsel %vm432_vm1, %v418_v58, %v400_v56  ;;  %v1967_v7 = vsub.s32 0, %v1960_v63  ;;  %v1982_v25 = vsub.s32 1, %v1960_v63  ;;  %v2034_v51 = vld [vmem:[%s2489_s3 + $0x6] ss:$8 sm:$0x3] }
 0x15c   :  { %v424_v0 = vsel %vm423_vm0, %v381_v60, %v379_v59  ;;  %vm446_vm3 = vcmp.lt.s32.totalorder %v1988_v30, 48  ;;  %vm467_vm4 = vcmp.lt.s32.totalorder %v1988_v30, 32  ;;  %vm489_vm5 = vcmp.lt.s32.totalorder %v1988_v30, 16  ;;  %s1803_s3 = smov 3  }
 0x15d   :  { %v438_v2 = vsel %vm437_vm2, %v424_v0, %v433_v1  ;;  %v425_v3 = vsel %vm423_vm0, %v382_v62, %v380_v61  ;;  %v513_v16 = vrot.slane %v1575_v15, %v1967_v7  ;;  %v517_v28 = vrot.slane %v1575_v15, %v1982_v25 }
 0x15e   :  { %440 = vrot.lane.b32.xlu0 %v438_v2, %s1798_s2  ;;  %v439_v6 = vsel %vm437_vm2, %v425_v3, %v434_v4  ;;  %v454_v37 = vrot.slane %v449_v31, %v1967_v7  ;;  %v458_v38 = vrot.slane %v449_v31, %v1982_v25  ;;  %v476_v40 = vrot.slane %v1996_v32, %v1967_v7 }
 0x15f   :  { %442 = vrot.lane.b32.xlu1 %v439_v6, %s1798_s2  ;;  %v1974_v18 = vmul.f32 %v513_v16, %v438_v2  ;;  %v1985_v29 = vmul.f32 %v517_v28, %v439_v6  ;;  %v480_v41 = vrot.slane %v1996_v32, %v1982_v25  ;;  %v498_v44 = vrot.slane %v2002_v34, %v1967_v7 }
 0x160   :  { %vm526_vm6 = vcmp.lt.s32.totalorder %v1988_v30, 112  ;;  %vm548_vm7 = vcmp.lt.s32.totalorder %v1988_v30, 96  ;;  %v2520_v49 = vrot.slane %v2002_v34, %v1982_v25  ;;  %vm570_vm8 = vcmp.lt.s32.totalorder %v1988_v30, 80 }
 0x161   :  { %v1222_v19 = vmul.f32 0.01844979, %v1974_v18  ;;  %v1220_v22 = vmul.f32 -0.044326622, %v1974_v18  ;;  %v631_v33 = vmul.f32 -0.06573509, %v1985_v29 }
 0x162   :  { %463 = vrot.lane.b32.xlu0 %v438_v2, %s1799_s12  ;;  %v630_v35 = vmul.f32 -0.06573509, %v1974_v18  ;;  %v750_v36 = vmul.f32 0.07863997, %v1985_v29  ;;  %v749_v39 = vmul.f32 0.07863997, %v1974_v18 }
 0x163   :  { %465 = vrot.lane.b32.xlu1 %v439_v6, %s1799_s12  ;;  %v1226_v23 = vrot.slane %v1222_v19, 2  ;;  %v635_v46 = vrot.slane %v631_v33, 2  ;;  %v870_v53 = vmul.f32 -0.15515529, %v1985_v29  ;;  %v628_v55 = vmul.f32 -0.072310574, %v1974_v18 }
 0x164   :  { %v634_v52 = vrot.slane %v630_v35, 2  ;;  %v754_v56 = vrot.slane %v750_v36, 2  ;;  %v869_v57 = vmul.f32 -0.15515529, %v1974_v18  ;;  %v629_v59 = vmul.f32 -0.072310574, %v1985_v29 }
 0x165   :  { %v1979_v24 = vadd.f32 %v1226_v23, %v1220_v22  ;;  %v753_v60 = vrot.slane %v749_v39, 2  ;;  %v1103_v61 = vmul.f32 0.0056347544, %v1985_v29  ;;  %v748_v1 = vmul.f32 0.023827868, %v1985_v29 }
 0x166   :  { %485 = vrot.lane.b32.xlu0 %v438_v2, %s1795_s29  ;;  %v2054_v4 = vadd.f32 %v635_v46, %v629_v59  ;;  %v874_v15 = vrot.slane %v870_v53, 2  ;;  %v868_v22 = vmul.f32 0.034306347, %v1985_v29  ;;  %v873_v23 = vrot.slane %v869_v57, 2 }
 0x167   :  { %487 = vrot.lane.b32.xlu1 %v439_v6, %s1795_s29  ;;  %v2058_v19 = vadd.f32 %v754_v56, %v748_v1  ;;  %v1102_v28 = vmul.f32 0.0056347544, %v1974_v18  ;;  %v867_v33 = vmul.f32 0.034306347, %v1974_v18  ;;  %v1101_v35 = vmul.f32 0.06617014, %v1985_v29 }
 0x168   :  { %v1107_v36 = vrot.slane %v1103_v61, 2  ;;  %v2072_v53 = vmul.f32 -0.044326622, %v1985_v29  ;;  %v2079_v57 = vadd.f32 %v874_v15, %v868_v22  ;;  %v2082_v59 = vmul.f32 0.01844979, %v1985_v29 }
 0x169   :  { %v2084_v61 = vadd.f32 %v873_v23, %v867_v33  ;;  %v1106_v1 = vrot.slane %v1102_v28, 2  ;;  %v2096_v15 = vmul.f32 -0.1197317, %v1974_v18  ;;  %v2099_v22 = vmul.f32 0.037287243, %v1974_v18 }
 0x16a   :  { %522 = vrot.lane.b32.xlu0 %v438_v2, %s1800_s13  ;;  %vm688_vm9 = vcmp.lt.s32.totalorder %v1988_v30, 3  ;;  %vm807_vm10 = vcmp.lt.s32.totalorder %v1988_v30, 2  ;;  %vm927_vm11 = vcmp.lt.s32.totalorder %v1988_v30, 1  ;;  %vm1160_vm12 = vcmp.lt.s32.totalorder %v1988_v30, 127 }
 0x16b   :  { %524 = vrot.lane.b32.xlu1 %v439_v6, %s1800_s13  ;;  %vm1280_vm13 = vcmp.lt.s32.totalorder %v1988_v30, 126  ;;  %vm1400_vm14 = vcmp.lt.s32.totalorder %v1988_v30, 125 }
 0x16e   :  { %544 = vrot.lane.b32.xlu0 %v438_v2, %s1801_s14 }
 0x16f   :  { %546 = vrot.lane.b32.xlu1 %v439_v6, %s1801_s14 }
 0x172   :  { %566 = vrot.lane.b32.xlu0 %v438_v2, %s1802_s15  ;;  %v747_v2 = vmul.f32 0.023827868, %v1974_v18 }
 0x173   :  { %568 = vrot.lane.b32.xlu1 %v439_v6, %s1802_s15  ;;  %v2056_v6 = vadd.f32 %v634_v52, %v628_v55  ;;  %v1100_v52 = vmul.f32 0.06617014, %v1974_v18 }
 0x174   :  { %v2062_v32 = vadd.f32 %v753_v60, %v747_v2  ;;  %v2087_v2 = vmul.f32 -0.1197317, %v1985_v29 }
 0x1d0   :  { %v441_v16 = vpop.permute.xlu0 %440 }
 0x1d1   :  { %v443_v31 = vpop.permute.xlu1 %442 }
 0x1d2   :  { %v447_v39 = vsel %vm446_vm3, %v441_v16, %v443_v31  ;;  %v448_v46 = vsel %vm446_vm3, %v443_v31, %v441_v16  ;;  %v2090_v16 = vmul.f32 0.037287243, %v1985_v29  ;;  %v2093_v31 = vadd.f32 %v1107_v36, %v1101_v35 }
 0x1d3   :  { %v2074_v55 = vmul.f32 %v454_v37, %v448_v46  ;;  %v2076_v56 = vmul.f32 %v458_v38, %v447_v39 }
 0x1d4   :  { %v464_v60 = vpop.permute.xlu0 %463 }
 0x1d5   :  { %v466_v37 = vpop.permute.xlu1 %465  ;;  %v591_v38 = vmul.f32 -0.036575, %v2076_v56  ;;  %v589_v33 = vmul.f32 -0.0980663, %v2076_v56  ;;  %v590_v39 = vmul.f32 -0.036575, %v2074_v55 }
 0x1d6   :  { %v468_v23 = vsel %vm467_vm4, %v464_v60, %v466_v37  ;;  %v469_v28 = vsel %vm467_vm4, %v466_v37, %v464_v60  ;;  %v588_v3 = vmul.f32 -0.0980663, %v2074_v55  ;;  %v2114_v62 = vmul.f32 0.06323549, %v2076_v56 }
 0x1d7   :  { %v2107_v46 = vmul.f32 %v476_v40, %v469_v28  ;;  %v2109_v35 = vmul.f32 %v480_v41, %v468_v23  ;;  %v595_v36 = vrot.slane %v591_v38, 2  ;;  %v594_v58 = vrot.slane %v590_v39, 2 }
 0x1d8   :  { %v486_v0 = vpop.permute.xlu0 %485  ;;  %v2117_v60 = vmul.f32 0.20810845, %v2076_v56  ;;  %v2122_v41 = vmul.f32 0.06323549, %v2074_v55  ;;  %v2125_v38 = vmul.f32 0.20810845, %v2074_v55  ;;  %v2127_v23 = vadd.f32 %v1106_v1, %v1100_v52 }
 0x1d9   :  { %v488_v54 = vpop.permute.xlu1 %487  ;;  %v603_v40 = vmul.f32 0.08107626, %v2109_v35  ;;  %v599_v50 = vadd.f32 %v595_v36, %v589_v33  ;;  %v602_v37 = vmul.f32 0.08107626, %v2107_v46  ;;  %v601_v52 = vmul.f32 0.020147366, %v2109_v35 }
 0x1da   :  { %v490_v28 = vsel %vm489_vm5, %v486_v0, %v488_v54  ;;  %v491_v39 = vsel %vm489_vm5, %v488_v54, %v486_v0  ;;  %v598_v54 = vadd.f32 %v594_v58, %v588_v3  ;;  %v600_v0 = vmul.f32 0.020147366, %v2107_v46 }
 0x1db   :  { %v2137_v47 = vmul.f32 %v498_v44, %v491_v39  ;;  %v2142_v43 = vmul.f32 %v2520_v49, %v490_v28  ;;  %v607_v1 = vrot.slane %v603_v40, 2  ;;  %v606_v33 = vrot.slane %v602_v37, 2 }
 0x1dc   :  { %v523_v27 = vpop.permute.xlu0 %522  ;;  %v714_v36 = vrot.slane %v2117_v60, 2  ;;  %v720_v34 = vmul.f32 -0.030303804, %v2109_v35  ;;  %v722_v49 = vmul.f32 0.041853603, %v2109_v35  ;;  %v2521_v60 = vrot.slane %v2008_v17, %v1967_v7 }
 0x1dd   :  { %v525_v21 = vpop.permute.xlu1 %524  ;;  %v611_v44 = vadd.f32 %v607_v1, %v601_v52  ;;  %v617_v39 = vmul.f32 0.22063641, %v2142_v43  ;;  %v610_v58 = vadd.f32 %v606_v33, %v600_v0  ;;  %v616_v3 = vmul.f32 0.22063641, %v2137_v47 }
 0x1de   :  { %v527_v28 = vsel %vm526_vm6, %v523_v27, %v525_v21  ;;  %v528_v40 = vsel %vm526_vm6, %v525_v21, %v523_v27  ;;  %v2522_v52 = vrot.slane %v2008_v17, %v1982_v25  ;;  %v615_v11 = vmul.f32 0.13128182, %v2142_v43 }
 0x1df   :  { %v2159_v37 = vmul.f32 %v2521_v60, %v527_v28  ;;  %v621_v8 = vrot.slane %v617_v39, 2  ;;  %v613_v12 = vadd.f32 %v611_v44, %v599_v50  ;;  %v614_v21 = vmul.f32 0.13128182, %v2137_v47 }
 0x1e0   :  { %v2164_v1 = vmul.f32 %v2522_v52, %v528_v40  ;;  %v545_v14 = vpop.permute.xlu0 %544  ;;  %v620_v27 = vrot.slane %v616_v3, 2  ;;  %v612_v60 = vadd.f32 %v610_v58, %v598_v54  ;;  %v726_v42 = vrot.slane %v722_v49, 2 }
 0x1e1   :  { %v547_v33 = vpop.permute.xlu1 %546  ;;  %v625_v48 = vadd.f32 %v621_v8, %v615_v11  ;;  %v644_v50 = vmul.f32 -0.016969545, %v2159_v37  ;;  %v2523_v44 = vrot.slane %v2024_v45, %v1982_v25  ;;  %v2524_v54 = vrot.slane %v2024_v45, %v1967_v7 }
 0x1e2   :  { %v645_v28 = vmul.f32 -0.016969545, %v2164_v1  ;;  %v549_v17 = vsel %vm548_vm7, %v545_v14, %v547_v33  ;;  %v550_v40 = vsel %vm548_vm7, %v547_v33, %v545_v14  ;;  %v624_v39 = vadd.f32 %v620_v27, %v614_v21 }
 0x1e3   :  { %v2178_v3 = vmul.f32 %v2523_v44, %v550_v40  ;;  %v627_v52 = vadd.f32 %v625_v48, %v613_v12  ;;  %v643_v8 = vmul.f32 -0.1239707, %v2164_v1  ;;  %v2184_v49 = vmul.f32 %v2524_v54, %v549_v17 }
 0x1e4   :  { %v649_v11 = vrot.slane %v645_v28, 2  ;;  %v567_v58 = vpop.permute.xlu0 %566  ;;  %v626_v0 = vadd.f32 %v624_v39, %v612_v60  ;;  %v642_v14 = vmul.f32 -0.1239707, %v2159_v37  ;;  %v648_v21 = vrot.slane %v644_v50, 2 }
 0x1e5   :  { %v569_v27 = vpop.permute.xlu1 %568  ;;  %v641_v33 = vadd.f32 %v2054_v4, %v627_v52  ;;  %v659_v40 = vmul.f32 -0.042324483, %v2178_v3  ;;  %v730_v12 = vadd.f32 %v726_v42, %v720_v34  ;;  %v2525_v60 = vrot.slane %v2034_v51, %v1967_v7 }
 0x1e6   :  { %v653_v26 = vadd.f32 %v649_v11, %v643_v8  ;;  %v571_v48 = vsel %vm570_vm8, %v567_v58, %v569_v27  ;;  %v572_v45 = vsel %vm570_vm8, %v569_v27, %v567_v58  ;;  %v640_v28 = vadd.f32 %v2056_v6, %v626_v0 }
 0x1e7   :  { %v652_v17 = vadd.f32 %v648_v21, %v642_v14  ;;  %v2197_v39 = vmul.f32 %v2525_v60, %v571_v48  ;;  %v2526_v4 = vrot.slane %v2034_v51, %v1982_v25  ;;  %v657_v42 = vmul.f32 -0.087691456, %v2178_v3 }
 0x1e8   :  { %v663_v34 = vrot.slane %v659_v40, 2  ;;  %v655_v44 = vadd.f32 %v653_v26, %v641_v33  ;;  %v658_v52 = vmul.f32 -0.042324483, %v2184_v49  ;;  %v718_v8 = vadd.f32 %v714_v36, %v2114_v62 }
 0x1e9   :  { %v2202_v50 = vmul.f32 %v2526_v4, %v572_v45  ;;  %v734_v6 = vmul.f32 -0.03562331, %v2142_v43  ;;  %v656_v58 = vmul.f32 -0.087691456, %v2184_v49  ;;  %v654_v51 = vadd.f32 %v652_v17, %v640_v28 }
 0x1ea   :  { %v667_v0 = vadd.f32 %v663_v34, %v657_v42  ;;  %v662_v14 = vrot.slane %v658_v52, 2  ;;  %v672_v21 = vmul.f32 -0.02251934, %v2197_v39  ;;  %v736_v27 = vmul.f32 0.028746713, %v2142_v43 }
 0x1eb   :  { %v671_v11 = vmul.f32 -0.023107082, %v2202_v50  ;;  %v673_v54 = vmul.f32 -0.02251934, %v2202_v50  ;;  %v670_v33 = vmul.f32 -0.023107082, %v2197_v39  ;;  %v732_v40 = vadd.f32 %v730_v12, %v718_v8 }
 0x1ec   :  { %v764_v62 = vmul.f32 0.0763141, %v2164_v1  ;;  %v669_v36 = vadd.f32 %v667_v0, %v655_v44  ;;  %v666_v48 = vadd.f32 %v662_v14, %v656_v58  ;;  %v676_v45 = vrot.slane %v672_v21, 2 }
 0x1ed   :  { %v677_v26 = vrot.slane %v673_v54, 2  ;;  %v740_v60 = vrot.slane %v736_v27, 2  ;;  %v762_v42 = vmul.f32 0.04126895, %v2164_v1  ;;  %v778_v28 = vmul.f32 0.048750743, %v2178_v3 }
 0x1ee   :  { %v768_v34 = vrot.slane %v764_v62, 2  ;;  %v668_v17 = vadd.f32 %v666_v48, %v654_v51  ;;  %v680_v52 = vadd.f32 %v676_v45, %v670_v33  ;;  %v792_v54 = vmul.f32 0.015180231, %v2202_v50 }
 0x1ef   :  { %v681_v4 = vadd.f32 %v677_v26, %v671_v11  ;;  %v744_v20 = vadd.f32 %v740_v60, %v734_v6  ;;  %v776_v12 = vmul.f32 -0.08342763, %v2178_v3  ;;  %v782_v8 = vrot.slane %v778_v28, 2 }
 0x1f0   :  { %v772_v5 = vadd.f32 %v768_v34, %v762_v42  ;;  %v682_v44 = vadd.f32 %v680_v52, %v668_v17  ;;  %v796_v58 = vrot.slane %v792_v54, 2  ;;  %v721_v11 = vmul.f32 0.041853603, %v2107_v46 }
 0x1f1   :  { %v683_v10 = vadd.f32 %v681_v4, %v669_v36  ;;  %v746_v0 = vadd.f32 %v744_v20, %v732_v40  ;;  %v786_v14 = vadd.f32 %v782_v8, %v776_v12  ;;  %v790_v21 = vmul.f32 0.020858388, %v2202_v50 }
 0x1f2   :  { %v719_v51 = vmul.f32 -0.030303804, %v2107_v46  ;;  %v735_v6 = vmul.f32 0.028746713, %v2137_v47  ;;  %684 = vrot.lane.b32.xlu0 %v682_v44, %s1803_s3  ;;  %v725_v26 = vrot.slane %v721_v11, 2  ;;  %v2527_v40 = vrot.slane %v2125_v38, 2 }
 0x1f3   :  { %686 = vrot.lane.b32.xlu1 %v683_v10, %s1803_s3  ;;  %v760_v27 = vadd.f32 %v2058_v19, %v746_v0  ;;  %v733_v33 = vmul.f32 -0.03562331, %v2137_v47  ;;  %v763_v20 = vmul.f32 0.0763141, %v2159_v37  ;;  %v761_v36 = vmul.f32 0.04126895, %v2159_v37 }
 0x1f4   :  { %v717_v62 = vadd.f32 %v2527_v40, %v2122_v41  ;;  %v739_v10 = vrot.slane %v735_v6, 2  ;;  %v777_v48 = vmul.f32 0.048750743, %v2184_v49  ;;  %v800_v60 = vadd.f32 %v796_v58, %v790_v21 }
 0x1f5   :  { %v774_v45 = vadd.f32 %v772_v5, %v760_v27  ;;  %v729_v4 = vadd.f32 %v725_v26, %v719_v51  ;;  %v767_v42 = vrot.slane %v763_v20, 2  ;;  %v775_v19 = vmul.f32 -0.08342763, %v2184_v49 }
 0x1f6   :  { %v743_v34 = vadd.f32 %v739_v10, %v733_v33  ;;  %v781_v28 = vrot.slane %v777_v48, 2  ;;  %v791_v17 = vmul.f32 0.015180231, %v2197_v39  ;;  %v789_v38 = vmul.f32 0.020858388, %v2197_v39 }
 0x1f7   :  { %v788_v52 = vadd.f32 %v786_v14, %v774_v45  ;;  %v731_v54 = vadd.f32 %v729_v4, %v717_v62  ;;  %v830_v41 = vmul.f32 -0.14473593, %v2076_v56  ;;  %v828_v8 = vmul.f32 0.049754445, %v2076_v56 }
 0x1f8   :  { %v795_v12 = vrot.slane %v791_v17, 2  ;;  %v842_v5 = vmul.f32 -0.13101767, %v2109_v35  ;;  %v2528_v44 = vrot.slane %v2082_v59, 2  ;;  %v771_v21 = vadd.f32 %v767_v42, %v761_v36 }
 0x1f9   :  { %v802_v58 = vadd.f32 %v800_v60, %v788_v52  ;;  %v745_v11 = vadd.f32 %v743_v34, %v731_v54  ;;  %v834_v51 = vrot.slane %v830_v41, 2  ;;  %v785_v14 = vadd.f32 %v781_v28, %v775_v19 }
 0x1fa   :  { %v2240_v0 = vadd.f32 %v2528_v44, %v2072_v53  ;;  %v840_v6 = vmul.f32 -0.016143924, %v2109_v35  ;;  %v846_v27 = vrot.slane %v842_v5, 2  ;;  %v856_v26 = vmul.f32 -0.06643707, %v2142_v43 }
 0x1fb   :  { %805 = vrot.lane.b32.xlu1 %v802_v58, %s1804_s26  ;;  %v759_v33 = vadd.f32 %v2062_v32, %v745_v11  ;;  %v799_v20 = vadd.f32 %v795_v12, %v789_v38  ;;  %v854_v59 = vmul.f32 -0.12509121, %v2142_v43  ;;  %v884_v53 = vmul.f32 -0.12756252, %v2164_v1 }
 0x1fc   :  { %v838_v40 = vadd.f32 %v834_v51, %v828_v8  ;;  %v850_v62 = vadd.f32 %v846_v27, %v840_v6  ;;  %v860_v10 = vrot.slane %v856_v26, 2  ;;  %v898_v36 = vmul.f32 -0.15048398, %v2178_v3 }
 0x1fd   :  { %v773_v48 = vadd.f32 %v771_v21, %v759_v33  ;;  %v882_v45 = vmul.f32 -0.10789823, %v2164_v1  ;;  %v888_v60 = vrot.slane %v884_v53, 2  ;;  %v912_v4 = vmul.f32 -0.058314957, %v2202_v50 }
 0x1fe   :  { %v852_v42 = vadd.f32 %v850_v62, %v838_v40  ;;  %v864_v34 = vadd.f32 %v860_v10, %v854_v59  ;;  %v902_v19 = vrot.slane %v898_v36, 2  ;;  %v829_v32 = vmul.f32 -0.14473593, %v2074_v55 }
 0x1ff   :  { %v787_v28 = vadd.f32 %v785_v14, %v773_v48  ;;  %v896_v17 = vmul.f32 0.05529543, %v2178_v3  ;;  %v910_v52 = vmul.f32 0.063699365, %v2202_v50  ;;  %v916_v54 = vrot.slane %v912_v4, 2 }
 0x200   :  { %v866_v38 = vadd.f32 %v864_v34, %v852_v42  ;;  %v892_v41 = vadd.f32 %v888_v60, %v882_v45  ;;  %v833_v12 = vrot.slane %v829_v32, 2  ;;  %v841_v8 = vmul.f32 -0.13101767, %v2107_v46 }
 0x201   :  { %v801_v5 = vadd.f32 %v799_v20, %v787_v28  ;;  %v827_v44 = vmul.f32 0.049754445, %v2074_v55  ;;  %v839_v58 = vmul.f32 -0.016143924, %v2107_v46  ;;  %v855_v11 = vmul.f32 -0.06643707, %v2137_v47 }
 0x202   :  { %v880_v21 = vadd.f32 %v2079_v57, %v866_v38  ;;  %v906_v51 = vadd.f32 %v902_v19, %v896_v17  ;;  %v920_v14 = vadd.f32 %v916_v54, %v910_v52  ;;  %v845_v6 = vrot.slane %v841_v8, 2 }
 0x203   :  { %803 = vrot.lane.b32.xlu0 %v801_v5, %s1804_s26  ;;  %v837_v27 = vadd.f32 %v833_v12, %v827_v44  ;;  %v853_v26 = vmul.f32 -0.12509121, %v2137_v47  ;;  %v859_v33 = vrot.slane %v855_v11, 2  ;;  %v883_v59 = vmul.f32 -0.12756252, %v2159_v37 }
 0x204   :  { %v894_v20 = vadd.f32 %v892_v41, %v880_v21  ;;  %v849_v53 = vadd.f32 %v845_v6, %v839_v58  ;;  %v881_v40 = vmul.f32 -0.10789823, %v2159_v37  ;;  %v897_v62 = vmul.f32 -0.15048398, %v2184_v49 }
 0x205   :  { %v863_v10 = vadd.f32 %v859_v33, %v853_v26  ;;  %v887_v36 = vrot.slane %v883_v59, 2  ;;  %v895_v57 = vmul.f32 0.05529543, %v2184_v49  ;;  %v911_v48 = vmul.f32 -0.058314957, %v2197_v39 }
 0x206   :  { %v908_v45 = vadd.f32 %v906_v51, %v894_v20  ;;  %v851_v60 = vadd.f32 %v849_v53, %v837_v27  ;;  %v901_v4 = vrot.slane %v897_v62, 2  ;;  %v1063_v42 = vmul.f32 -0.0009553086, %v2076_v56 }
 0x207   :  { %v891_v34 = vadd.f32 %v887_v36, %v881_v40  ;;  %v909_v19 = vmul.f32 0.063699365, %v2197_v39  ;;  %v1061_v32 = vmul.f32 -0.11961992, %v2076_v56  ;;  %v1075_v28 = vmul.f32 0.054425064, %v2109_v35 }
 0x208   :  { %v922_v17 = vadd.f32 %v920_v14, %v908_v45  ;;  %v865_v52 = vadd.f32 %v863_v10, %v851_v60  ;;  %v915_v54 = vrot.slane %v911_v48, 2  ;;  %v1067_v38 = vrot.slane %v1063_v42, 2 }
 0x209   :  { %v1073_v41 = vmul.f32 0.14304875, %v2109_v35  ;;  %v1079_v12 = vrot.slane %v1075_v28, 2  ;;  %v1089_v8 = vmul.f32 0.059372228, %v2142_v43  ;;  %v1347_v5 = vrot.slane %v2090_v16, 2 }
 0x20a   :  { %925 = vrot.lane.b32.xlu1 %v922_v17, %s1805_s27  ;;  %v879_v44 = vadd.f32 %v2084_v61, %v865_v52  ;;  %v905_v58 = vadd.f32 %v901_v4, %v895_v57  ;;  %v1087_v11 = vmul.f32 -0.037480965, %v2142_v43  ;;  %v1117_v21 = vmul.f32 -0.1236237, %v2164_v1 }
 0x20b   :  { %v1071_v51 = vadd.f32 %v1067_v38, %v1061_v32  ;;  %v1083_v14 = vadd.f32 %v1079_v12, %v1073_v41  ;;  %v1093_v6 = vrot.slane %v1089_v8, 2  ;;  %v1131_v27 = vmul.f32 0.010102276, %v2178_v3 }
 0x20c   :  { %v893_v26 = vadd.f32 %v891_v34, %v879_v44  ;;  %v919_v33 = vadd.f32 %v915_v54, %v909_v19  ;;  %v1121_v59 = vrot.slane %v1117_v21, 2  ;;  %v1145_v20 = vmul.f32 0.049139615, %v2202_v50 }
 0x20d   :  { %v1085_v53 = vadd.f32 %v1083_v14, %v1071_v51  ;;  %v1097_v40 = vadd.f32 %v1093_v6, %v1087_v11  ;;  %v1115_v62 = vmul.f32 -0.07783998, %v2164_v1  ;;  %v1135_v61 = vrot.slane %v1131_v27, 2 }
 0x20e   :  { %v907_v10 = vadd.f32 %v905_v58, %v893_v26  ;;  %v1129_v36 = vmul.f32 -0.030224381, %v2178_v3  ;;  %v1149_v57 = vrot.slane %v1145_v20, 2  ;;  %v1062_v48 = vmul.f32 -0.0009553086, %v2074_v55 }
 0x20f   :  { %v1099_v45 = vadd.f32 %v1097_v40, %v1085_v53  ;;  %v1125_v60 = vadd.f32 %v1121_v59, %v1115_v62  ;;  %v1143_v4 = vmul.f32 -0.06299811, %v2202_v50  ;;  %v1074_v42 = vmul.f32 0.054425064, %v2107_v46 }
 0x210   :  { %v921_v34 = vadd.f32 %v919_v33, %v907_v10  ;;  %v1139_v19 = vadd.f32 %v1135_v61, %v1129_v36  ;;  %v1060_v32 = vmul.f32 -0.11961992, %v2074_v55  ;;  %v1066_v28 = vrot.slane %v1062_v48, 2 }
 0x211   :  { %v1113_v17 = vadd.f32 %v2093_v31, %v1099_v45  ;;  %v1072_v52 = vmul.f32 0.14304875, %v2107_v46  ;;  %v1078_v54 = vrot.slane %v1074_v42, 2  ;;  %v1088_v38 = vmul.f32 0.059372228, %v2137_v47 }
 0x212   :  { %923 = vrot.lane.b32.xlu0 %v921_v34, %s1805_s27  ;;  %v1153_v41 = vadd.f32 %v1149_v57, %v1143_v4  ;;  %v1086_v12 = vmul.f32 -0.037480965, %v2137_v47  ;;  %v1116_v8 = vmul.f32 -0.1236237, %v2159_v37  ;;  %v1130_v44 = vmul.f32 0.010102276, %v2184_v49 }
 0x213   :  { %v1127_v58 = vadd.f32 %v1125_v60, %v1113_v17  ;;  %v1070_v11 = vadd.f32 %v1066_v28, %v1060_v32  ;;  %v1082_v21 = vadd.f32 %v1078_v54, %v1072_v52  ;;  %v1092_v51 = vrot.slane %v1088_v38, 2 }
 0x214   :  { %v1114_v31 = vmul.f32 -0.07783998, %v2159_v37  ;;  %v1120_v14 = vrot.slane %v1116_v8, 2  ;;  %v1134_v6 = vrot.slane %v1130_v44, 2  ;;  %v1144_v27 = vmul.f32 0.049139615, %v2197_v39 }
 0x215   :  { %v1141_v26 = vadd.f32 %v1139_v19, %v1127_v58  ;;  %v1084_v33 = vadd.f32 %v1082_v21, %v1070_v11  ;;  %v1096_v59 = vadd.f32 %v1092_v51, %v1086_v12  ;;  %v1183_v20 = vmul.f32 -0.05512213, %v2076_v56 }
 0x216   :  { %v1124_v53 = vadd.f32 %v1120_v14, %v1114_v31  ;;  %v1128_v40 = vmul.f32 -0.030224381, %v2184_v49  ;;  %v1142_v62 = vmul.f32 -0.06299811, %v2197_v39  ;;  %v1148_v61 = vrot.slane %v1144_v27, 2 }
 0x217   :  { %v1155_v10 = vadd.f32 %v1153_v41, %v1141_v26  ;;  %v1098_v36 = vadd.f32 %v1096_v59, %v1084_v33  ;;  %v1187_v57 = vrot.slane %v1183_v20, 2  ;;  %v1195_v48 = vmul.f32 -0.031153303, %v2109_v35 }
 0x218   :  { %v1138_v45 = vadd.f32 %v1134_v6, %v1128_v40  ;;  %v1181_v60 = vmul.f32 -0.027712943, %v2076_v56  ;;  %v1193_v4 = vmul.f32 0.1197119, %v2109_v35  ;;  %v1209_v42 = vmul.f32 -0.0068313004, %v2142_v43 }
 0x219   :  { %1158 = vrot.lane.b32.xlu1 %v1155_v10, %s1806_s30  ;;  %v1112_v34 = vadd.f32 %v2127_v23, %v1098_v36  ;;  %v1199_v19 = vrot.slane %v1195_v48, 2  ;;  %v1207_v32 = vmul.f32 -0.1025583, %v2142_v43  ;;  %v1237_v28 = vmul.f32 -0.00028984042, %v2164_v1 }
 0x21a   :  { %v1152_v17 = vadd.f32 %v1148_v61, %v1142_v62  ;;  %v1213_v52 = vrot.slane %v1209_v42, 2  ;;  %v1235_v54 = vmul.f32 0.10597534, %v2164_v1  ;;  %v1251_v38 = vmul.f32 -0.10969288, %v2178_v3 }
 0x21b   :  { %v1126_v41 = vadd.f32 %v1124_v53, %v1112_v34  ;;  %v1191_v12 = vadd.f32 %v1187_v57, %v1181_v60  ;;  %v1203_v8 = vadd.f32 %v1199_v19, %v1193_v4  ;;  %v1241_v44 = vrot.slane %v1237_v28, 2 }
 0x21c   :  { %v1217_v58 = vadd.f32 %v1213_v52, %v1207_v32  ;;  %v1249_v11 = vmul.f32 0.080976345, %v2178_v3  ;;  %v1255_v21 = vrot.slane %v1251_v38, 2  ;;  %v1265_v23 = vmul.f32 -0.056444034, %v2202_v50 }
 0x21d   :  { %v1140_v51 = vadd.f32 %v1138_v45, %v1126_v41  ;;  %v1205_v31 = vadd.f32 %v1203_v8, %v1191_v12  ;;  %v1263_v14 = vmul.f32 -0.08893919, %v2202_v50  ;;  %v1182_v6 = vmul.f32 -0.05512213, %v2074_v55 }
 0x21e   :  { %v1269_v27 = vrot.slane %v1265_v23, 2  ;;  %v1180_v26 = vmul.f32 -0.027712943, %v2074_v55  ;;  %v1194_v33 = vmul.f32 -0.031153303, %v2107_v46  ;;  %v2316_v59 = vadd.f32 %v1347_v5, %v2087_v2 }
 0x21f   :  { %v1154_v20 = vadd.f32 %v1152_v17, %v1140_v51  ;;  %v1219_v53 = vadd.f32 %v1217_v58, %v1205_v31  ;;  %v1245_v40 = vadd.f32 %v1241_v44, %v1235_v54  ;;  %v1186_v62 = vrot.slane %v1182_v6, 2 }
 0x220   :  { %v1259_v61 = vadd.f32 %v1255_v21, %v1249_v11  ;;  %v1192_v10 = vmul.f32 0.1197119, %v2107_v46  ;;  %v1198_v36 = vrot.slane %v1194_v33, 2  ;;  %v1208_v57 = vmul.f32 -0.0068313004, %v2137_v47 }
 0x221   :  { %1156 = vrot.lane.b32.xlu0 %v1154_v20, %s1806_s30  ;;  %v1233_v48 = vadd.f32 %v2240_v0, %v1219_v53  ;;  %v1273_v45 = vadd.f32 %v1269_v27, %v1263_v14  ;;  %v1206_v60 = vmul.f32 -0.1025583, %v2137_v47  ;;  %v1236_v2 = vmul.f32 -0.00028984042, %v2159_v37 }
 0x222   :  { %v1190_v16 = vadd.f32 %v1186_v62, %v1180_v26  ;;  %v1202_v5 = vadd.f32 %v1198_v36, %v1192_v10  ;;  %v1212_v4 = vrot.slane %v1208_v57, 2  ;;  %v1250_v42 = vmul.f32 -0.10969288, %v2184_v49 }
 0x223   :  { %v1247_v34 = vadd.f32 %v1245_v40, %v1233_v48  ;;  %v1234_v19 = vmul.f32 0.10597534, %v2159_v37  ;;  %v1240_v32 = vrot.slane %v1236_v2, 2  ;;  %v1264_v28 = vmul.f32 -0.056444034, %v2197_v39 }
 0x224   :  { %v1204_v17 = vadd.f32 %v1202_v5, %v1190_v16  ;;  %v1216_v52 = vadd.f32 %v1212_v4, %v1206_v60  ;;  %v1254_v54 = vrot.slane %v1250_v42, 2  ;;  %v1303_v0 = vmul.f32 0.13719857, %v2076_v56 }
 0x225   :  { %v1261_v38 = vadd.f32 %v1259_v61, %v1247_v34  ;;  %v1248_v41 = vmul.f32 0.080976345, %v2184_v49  ;;  %v1262_v12 = vmul.f32 -0.08893919, %v2197_v39  ;;  %v1268_v8 = vrot.slane %v1264_v28, 2 }
 0x226   :  { %v1218_v44 = vadd.f32 %v1216_v52, %v1204_v17  ;;  %v1244_v58 = vadd.f32 %v1240_v32, %v1234_v19  ;;  %v1307_v11 = vrot.slane %v1303_v0, 2  ;;  %v1315_v21 = vmul.f32 -0.048027575, %v2109_v35 }
 0x227   :  { %v1275_v23 = vadd.f32 %v1273_v45, %v1261_v38  ;;  %v1301_v51 = vmul.f32 0.057306457, %v2076_v56  ;;  %v1313_v31 = vmul.f32 -0.07245995, %v2109_v35  ;;  %v1329_v14 = vmul.f32 -0.0055004247, %v2142_v43 }
 0x228   :  { %v1232_v6 = vadd.f32 %v1979_v24, %v1218_v44  ;;  %v1258_v27 = vadd.f32 %v1254_v54, %v1248_v41  ;;  %v1272_v26 = vadd.f32 %v1268_v8, %v1262_v12  ;;  %v1319_v33 = vrot.slane %v1315_v21, 2 }
 0x229   :  { %1278 = vrot.lane.b32.xlu1 %v1275_v23, %s1807_s6  ;;  %v1311_v20 = vadd.f32 %v1307_v11, %v1301_v51  ;;  %v1327_v53 = vmul.f32 -0.08607356, %v2142_v43  ;;  %v1333_v40 = vrot.slane %v1329_v14, 2  ;;  %v1357_v62 = vmul.f32 -0.02183355, %v2164_v1 }
 0x22a   :  { %v1246_v61 = vadd.f32 %v1244_v58, %v1232_v6  ;;  %v1323_v10 = vadd.f32 %v1319_v33, %v1313_v31  ;;  %v1355_v36 = vmul.f32 -0.21190418, %v2164_v1  ;;  %v1371_v57 = vmul.f32 -0.15210491, %v2178_v3 }
 0x22b   :  { %v1337_v48 = vadd.f32 %v1333_v40, %v1327_v53  ;;  %v1361_v45 = vrot.slane %v1357_v62, 2  ;;  %v1369_v24 = vmul.f32 0.053483944, %v2178_v3  ;;  %v1385_v60 = vmul.f32 -0.011438905, %v2202_v50 }
 0x22c   :  { %v1260_v2 = vadd.f32 %v1258_v27, %v1246_v61  ;;  %v1325_v16 = vadd.f32 %v1323_v10, %v1311_v20  ;;  %v1375_v5 = vrot.slane %v1371_v57, 2  ;;  %v1302_v4 = vmul.f32 0.13719857, %v2074_v55 }
 0x22d   :  { %v1365_v42 = vadd.f32 %v1361_v45, %v1355_v36  ;;  %v1383_v34 = vmul.f32 0.03963045, %v2202_v50  ;;  %v1300_v19 = vmul.f32 0.057306457, %v2074_v55  ;;  %v1314_v32 = vmul.f32 -0.048027575, %v2107_v46 }
 0x22e   :  { %v1274_v28 = vadd.f32 %v1272_v26, %v1260_v2  ;;  %v1339_v17 = vadd.f32 %v1337_v48, %v1325_v16  ;;  %v1389_v52 = vrot.slane %v1385_v60, 2  ;;  %v1306_v54 = vrot.slane %v1302_v4, 2 }
 0x22f   :  { %v1312_v0 = vmul.f32 -0.07245995, %v2107_v46  ;;  %v1318_v38 = vrot.slane %v1314_v32, 2  ;;  %v1328_v41 = vmul.f32 -0.0055004247, %v2137_v47  ;;  %v1346_v12 = vrot.slane %v2099_v22, 2 }
 0x230   :  { %1276 = vrot.lane.b32.xlu0 %v1274_v28, %s1807_s6  ;;  %v1353_v8 = vadd.f32 %v2316_v59, %v1339_v17  ;;  %v1379_v44 = vadd.f32 %v1375_v5, %v1369_v24  ;;  %v1326_v58 = vmul.f32 -0.08607356, %v2137_v47  ;;  %v1356_v11 = vmul.f32 -0.02183355, %v2159_v37 }
 0x231   :  { %v1310_v21 = vadd.f32 %v1306_v54, %v1300_v19  ;;  %v1322_v23 = vadd.f32 %v1318_v38, %v1312_v0  ;;  %v1332_v51 = vrot.slane %v1328_v41, 2  ;;  %v1370_v31 = vmul.f32 -0.15210491, %v2184_v49 }
 0x232   :  { %v1367_v14 = vadd.f32 %v1365_v42, %v1353_v8  ;;  %v1393_v6 = vadd.f32 %v1389_v52, %v1383_v34  ;;  %v1360_v27 = vrot.slane %v1356_v11, 2  ;;  %v1384_v26 = vmul.f32 -0.011438905, %v2197_v39 }
 0x233   :  { %v1324_v33 = vadd.f32 %v1322_v23, %v1310_v21  ;;  %v1336_v22 = vadd.f32 %v1332_v51, %v1326_v58  ;;  %v1354_v20 = vmul.f32 -0.21190418, %v2159_v37  ;;  %v1374_v59 = vrot.slane %v1370_v31, 2 }
 0x234   :  { %v1381_v53 = vadd.f32 %v1379_v44, %v1367_v14  ;;  %v1350_v40 = vadd.f32 %v1346_v12, %v2096_v15  ;;  %v1368_v10 = vmul.f32 0.053483944, %v2184_v49  ;;  %v1388_v36 = vrot.slane %v1384_v26, 2 }
 0x235   :  { %v1338_v62 = vadd.f32 %v1336_v22, %v1324_v33  ;;  %v1364_v61 = vadd.f32 %v1360_v27, %v1354_v20  ;;  %v1382_v24 = vmul.f32 0.03963045, %v2197_v39  ;;  %v961_v4 = vmul.f32 0.0030572393, %v2107_v46 }
 0x236   :  { %v1395_v57 = vadd.f32 %v1393_v6, %v1381_v53  ;;  %v1378_v45 = vadd.f32 %v1374_v59, %v1368_v10  ;;  %v962_v15 = vmul.f32 0.0030572393, %v2109_v35  ;;  %v949_v42 = vmul.f32 -0.06537494, %v2074_v55 }
 0x237   :  { %v1352_v48 = vadd.f32 %v1350_v40, %v1338_v62  ;;  %v1392_v2 = vadd.f32 %v1388_v36, %v1382_v24  ;;  %v950_v34 = vmul.f32 -0.06537494, %v2076_v56  ;;  %v975_v19 = vmul.f32 0.0008491514, %v2137_v47 }
 0x238   :  { %1398 = vrot.lane.b32.xlu1 %v1395_v57, %s1808_s7  ;;  %v976_v32 = vmul.f32 0.0008491514, %v2142_v43  ;;  %v965_v28 = vrot.slane %v961_v4, 2  ;;  %v966_v17 = vrot.slane %v962_v15, 2  ;;  %v953_v52 = vrot.slane %v949_v42, 2 }
 0x239   :  { %v1366_v60 = vadd.f32 %v1364_v61, %v1352_v48  ;;  %v954_v54 = vrot.slane %v950_v34, 2  ;;  %v989_v0 = vmul.f32 -0.11669613, %v1974_v18  ;;  %v959_v12 = vmul.f32 -0.07768129, %v2107_v46 }
 0x23a   :  { %v960_v8 = vmul.f32 -0.07768129, %v2109_v35  ;;  %v979_v44 = vrot.slane %v975_v19, 2  ;;  %v980_v58 = vrot.slane %v976_v32, 2  ;;  %v947_v11 = vmul.f32 -0.18729042, %v2074_v55 }
 0x23b   :  { %v1380_v16 = vadd.f32 %v1378_v45, %v1366_v60  ;;  %v948_v21 = vmul.f32 -0.18729042, %v2076_v56  ;;  %v990_v23 = vmul.f32 -0.11669613, %v1985_v29  ;;  %v969_v51 = vadd.f32 %v965_v28, %v959_v12 }
 0x23c   :  { %v970_v31 = vadd.f32 %v966_v17, %v960_v8  ;;  %v973_v14 = vmul.f32 0.040421043, %v2137_v47  ;;  %v974_v6 = vmul.f32 0.040421043, %v2142_v43  ;;  %v957_v27 = vadd.f32 %v953_v52, %v947_v11 }
 0x23d   :  { %v1394_v5 = vadd.f32 %v1392_v2, %v1380_v16  ;;  %v958_v26 = vadd.f32 %v954_v54, %v948_v21  ;;  %v993_v33 = vrot.slane %v989_v0, 2  ;;  %v1003_v35 = vmul.f32 -0.1892348, %v2159_v37  ;;  %v2381_v59 = vld [vmem:[%s2490_s4] ss:$8 sm:$0x3] }
 0x23e   :  { %v983_v46 = vadd.f32 %v979_v44, %v973_v14  ;;  %v984_v22 = vadd.f32 %v980_v58, %v974_v6  ;;  %v1004_v20 = vmul.f32 -0.1892348, %v2164_v1  ;;  %v987_v55 = vmul.f32 -0.0041884677, %v1974_v18 }
 0x23f   :  { %1396 = vrot.lane.b32.xlu0 %v1394_v5, %s1808_s7  ;;  %v994_v56 = vrot.slane %v990_v23, 2  ;;  %v971_v43 = vadd.f32 %v969_v51, %v957_v27  ;;  %v972_v40 = vadd.f32 %v970_v31, %v958_v26  ;;  %v988_v62 = vmul.f32 -0.0041884677, %v1985_v29  ;;  %v1579_v18 = vld [vmem:[%s2490_s4 + $0x1] ss:$8 sm:$0x3] }
 0x240   :  { %v997_v61 = vadd.f32 %v993_v33, %v987_v55  ;;  %v1017_v10 = vmul.f32 0.09769243, %v2184_v49  ;;  %v1018_v36 = vmul.f32 0.09769243, %v2178_v3  ;;  %v1007_v45 = vrot.slane %v1003_v35, 2 }
 0x241   :  { %v985_v57 = vadd.f32 %v983_v46, %v971_v43  ;;  %v986_v48 = vadd.f32 %v984_v22, %v972_v40  ;;  %v1008_v24 = vrot.slane %v1004_v20, 2  ;;  %v696_v60 = vrot.slane %v2381_v59, %v1967_v7  ;;  %v1580_v34 = vld [vmem:[%s2490_s4 + $0x2] ss:$8 sm:$0x3] }
 0x242   :  { %v998_v2 = vadd.f32 %v994_v56, %v988_v62  ;;  %v1001_v29 = vmul.f32 0.12840904, %v2159_v37  ;;  %v700_v16 = vrot.slane %v2381_v59, %v1982_v25  ;;  %v1002_v5 = vmul.f32 0.12840904, %v2164_v1 }
 0x243   :  { %v1031_v4 = vmul.f32 0.05318294, %v2197_v39  ;;  %v1032_v15 = vmul.f32 0.05318294, %v2202_v50  ;;  %v816_v42 = vrot.slane %v1579_v18, %v1967_v7  ;;  %v1021_v19 = vrot.slane %v1017_v10, 2 }
 0x244   :  { %v1022_v32 = vrot.slane %v1018_v36, 2  ;;  %v999_v17 = vadd.f32 %v997_v61, %v985_v57  ;;  %v1000_v52 = vadd.f32 %v998_v2, %v986_v48  ;;  %v1011_v54 = vadd.f32 %v1007_v45, %v1001_v29  ;;  %v1581_v56 = vld [vmem:[%s2490_s4 + $0x3] ss:$8 sm:$0x3] }
 0x245   :  { %v1012_v1 = vadd.f32 %v1008_v24, %v1002_v5  ;;  %v820_v0 = vrot.slane %v1579_v18, %v1982_v25  ;;  %v1015_v12 = vmul.f32 -0.022597838, %v2184_v49  ;;  %v1016_v8 = vmul.f32 -0.022597838, %v2178_v3 }
 0x246   :  { %v936_v44 = vrot.slane %v1580_v34, %v1967_v7  ;;  %v940_v58 = vrot.slane %v1580_v34, %v1982_v25  ;;  %v1035_v11 = vrot.slane %v1031_v4, 2  ;;  %v1036_v21 = vrot.slane %v1032_v15, 2  ;;  %v1582_v62 = vld [vmem:[%s2490_s4 + $0x4] ss:$8 sm:$0x3] }
 0x247   :  { %v1025_v31 = vadd.f32 %v1021_v19, %v1015_v12  ;;  %v1026_v14 = vadd.f32 %v1022_v32, %v1016_v8  ;;  %v1013_v6 = vadd.f32 %v1011_v54, %v999_v17  ;;  %v1014_v27 = vadd.f32 %v1012_v1, %v1000_v52  ;;  %v1583_v24 = vld [vmem:[%s2490_s4 + $0x5] ss:$8 sm:$0x3]  ;;  %v1584_v17 = vld [vmem:[%s2490_s4 + $0x6] ss:$8 sm:$0x3] }
 0x248   :  { %v1029_v49 = vmul.f32 0.06599833, %v2197_v39  ;;  %v1030_v3 = vmul.f32 0.06599833, %v2202_v50  ;;  %v1049_v61 = vrot.slane %v1581_v56, %v1967_v7  ;;  %v1053_v10 = vrot.slane %v1581_v56, %v1982_v25  ;;  %s1810_s4 = smov [#allocation8]  }
 0x249   :  { %v1169_v45 = vrot.slane %v1582_v62, %v1967_v7  ;;  %v1173_v29 = vrot.slane %v1582_v62, %v1982_v25  ;;  %v1289_v19 = vrot.slane %v1583_v24, %v1967_v7  ;;  %v1293_v32 = vrot.slane %v1583_v24, %v1982_v25  ;;  %s1560_s19 = sshll.u32 %s1810_s4, 4  ;;  %s1561_s19 = int_to_ptr.vmem [resolvable:$true] %s1560_s19 }
 0x24a   :  { %v1039_v50 = vadd.f32 %v1035_v11, %v1029_v49  ;;  %v1040_v55 = vadd.f32 %v1036_v21, %v1030_v3  ;;  %v1413_v11 = vrot.slane %v1584_v17, %v1982_v25  ;;  %v1809_v62 = vmov 1966171168   ;;  %s1765_s20 = scalar_lea.vmem %s1561_s19, 2048  ;;  %p1770_p3 = scmp.lt.s32.totalorder %s1561_s19, %s1561_s19 }
 0x24b   :  { %p1766_p2 = scmp.ne.s32.totalorder %s1561_s19, %s1765_s20  ;;  %p1771_p4 = scmp.lt.s32.totalorder %s1765_s20, %s1765_s20 }
 0x24d   :  { %p1772_p5 = por %p1771_p4, %p1770_p3 }
 0x24f   :  { %p1773_p6 = pnand %p1772_p5, %p1766_p2 }
 0x264   :  { %v2366_v41 = vpop.permute.xlu0 %684 }
 0x265   :  { %v2364_v38 = vpop.permute.xlu1 %686 }
 0x266   :  { %v689_v26 = vsel %vm688_vm9, %v2366_v41, %v2364_v38  ;;  %v690_v33 = vsel %vm688_vm9, %v2364_v38, %v2366_v41 }
 0x267   :  { %v703_v43 = vmul.f32 %v696_v60, %v690_v33  ;;  %v704_v38 = vmul.f32 %v700_v16, %v689_v26 }
 0x26d   :  { %v806_v47 = vpop.permute.xlu1 %805 }
 0x275   :  { %v804_v53 = vpop.permute.xlu0 %803 }
 0x276   :  { %v808_v23 = vsel %vm807_vm10, %v804_v53, %v806_v47  ;;  %v809_v51 = vsel %vm807_vm10, %v806_v47, %v804_v53  ;;  %v1027_v47 = vadd.f32 %v1025_v31, %v1013_v6  ;;  %v1028_v53 = vadd.f32 %v1026_v14, %v1014_v27 }
 0x277   :  { %v823_v35 = vmul.f32 %v816_v42, %v809_v51  ;;  %v824_v39 = vmul.f32 %v820_v0, %v808_v23 }
 0x278   :  { %v1041_v57 = vadd.f32 %v1039_v50, %v1027_v47  ;;  %v1042_v48 = vadd.f32 %v1040_v55, %v1028_v53 }
 0x279   :  { %v825_v36 = vadd.f32 %v823_v35, %v703_v43  ;;  %v826_v18 = vadd.f32 %v824_v39, %v704_v38 }
 0x27a   :  { %v1056_v42 = vmul.f32 %v1049_v61, %v1041_v57  ;;  %v1057_v34 = vmul.f32 %v1053_v10, %v1042_v48  ;;  %v1466_v61 = vunpack.c.l.s4 %v1809_v62 }
 0x27c   :  { %v926_v37 = vpop.permute.xlu1 %925  ;;  %v1467_v10 = vunpack.c.0.s8 %v1466_v61 }
 0x284   :  { %v924_v28 = vpop.permute.xlu0 %923 }
 0x285   :  { %v928_v46 = vsel %vm927_vm11, %v924_v28, %v926_v37  ;;  %v929_v22 = vsel %vm927_vm11, %v926_v37, %v924_v28 }
 0x286   :  { %v943_v41 = vmul.f32 %v936_v44, %v929_v22  ;;  %v944_v40 = vmul.f32 %v940_v58, %v928_v46  ;;  %v1409_v58 = vrot.slane %v1584_v17, %v1967_v7 }
 0x288   :  { %v945_v60 = vadd.f32 %v943_v41, %v825_v36  ;;  %v946_v2 = vadd.f32 %v944_v40, %v826_v18  ;;  %v1470_v18 = vsub.s32 %v1467_v10, %v1960_v63 }
 0x28a   :  { %v1058_v52 = vadd.f32 %v1056_v42, %v945_v60  ;;  %v1059_v54 = vadd.f32 %v1057_v34, %v946_v2 }
 0x28b   :  { %v1159_v20 = vpop.permute.xlu1 %1158 }
 0x293   :  { %v1157_v59 = vpop.permute.xlu0 %1156 }
 0x294   :  { %v1161_v4 = vsel %vm1160_vm12, %v1157_v59, %v1159_v20  ;;  %v1162_v15 = vsel %vm1160_vm12, %v1159_v20, %v1157_v59 }
 0x295   :  { %v1176_v1 = vmul.f32 %v1169_v45, %v1161_v4  ;;  %v1177_v0 = vmul.f32 %v1173_v29, %v1162_v15  ;;  %v1447_v4 = vld [vmem:[#allocation3 + $0x8] sm:$0xff] }
 0x297   :  { %v1178_v21 = vadd.f32 %v1176_v1, %v1058_v52  ;;  %v1179_v23 = vadd.f32 %v1177_v0, %v1059_v54  ;;  %v2530_v52 = vld [vmem:[#allocation14_spill] sm:$0xff] }
 0x298   :  { %v2531_v1 = vld [vmem:[#allocation18_spill] sm:$0xff] }
 0x29b   :  { %v1279_v16 = vpop.permute.xlu1 %1278 }
 0x2a2   :  { %v1277_v5 = vpop.permute.xlu0 %1276 }
 0x2a3   :  { %v1281_v37 = vsel %vm1280_vm13, %v1277_v5, %v1279_v16  ;;  %v1282_v28 = vsel %vm1280_vm13, %v1279_v16, %v1277_v5  ;;  %v1446_v5 = vld [vmem:[#allocation3] sm:$0xff] }
 0x2a4   :  { %v1296_v12 = vmul.f32 %v1289_v19, %v1281_v37  ;;  %v1297_v8 = vmul.f32 %v1293_v32, %v1282_v28  ;;  %v1448_v19 = vld [vmem:[#allocation3 + $0x10] sm:$0xff]  ;;  %v1449_v32 = vld [vmem:[#allocation3 + $0x18] sm:$0xff]  ;;  %v1450_v37 = vld [vmem:[#allocation3 + $0x20] sm:$0xff] }
 0x2a5   :  { %v2529_v28 = vld [vmem:[#allocation12_spill] sm:$0xff] }
 0x2a6   :  { %v1298_v6 = vadd.f32 %v1296_v12, %v1178_v21  ;;  %v1299_v27 = vadd.f32 %v1297_v8, %v1179_v23  ;;  %v2532_v12 = vld [vmem:[#allocation20_spill] sm:$0xff] }
 0x2a7   :  { %v2534_v21 = vld [vmem:[#allocation24_spill] sm:$0xff] }
 0x2a8   :  { %v2535_v23 = vld [vmem:[#allocation16_spill] sm:$0xff] }
 0x2aa   :  { %v1399_v44 = vpop.permute.xlu1 %1398 }
 0x2b1   :  { %v1397_v51 = vpop.permute.xlu0 %1396 }
 0x2b2   :  { %v1401_v31 = vsel %vm1400_vm14, %v1397_v51, %v1399_v44  ;;  %v1402_v14 = vsel %vm1400_vm14, %v1399_v44, %v1397_v51  ;;  %v1451_v44 = vld [vmem:[#allocation3 + $0x28] sm:$0xff] }
 0x2b3   :  { %v1416_v49 = vmul.f32 %v1409_v58, %v1401_v31  ;;  %v1417_v3 = vmul.f32 %v1413_v11, %v1402_v14  ;;  %v1452_v58 = vld [vmem:[#allocation3 + $0x30] sm:$0xff]  ;;  %v2536_v51 = vld [vmem:[#allocation17_spill] sm:$0xff]  ;;  %v1454_v14 = vld [vmem:[#allocation3 + $0x40] sm:$0xff] }
 0x2b4   :  { %v2533_v11 = vld [vmem:[#allocation22_spill] sm:$0xff] }
 0x2b5   :  { %v1418_v26 = vadd.f32 %v1416_v49, %v1298_v6  ;;  %v1419_v33 = vadd.f32 %v1417_v3, %v1299_v27  ;;  %v1455_v6 = vld [vmem:[#allocation3 + $0x48] sm:$0xff]  ;;  %v1456_v27 = vld [vmem:[#allocation3 + $0x50] sm:$0xff] }
 0x2b6   :  { %v2537_v49 = vld [vmem:[#allocation13_spill] sm:$0xff] }
 0x2b7   :  { %v1585_v46 = vmul.f32 -1.442695, %v1418_v26  ;;  %v1586_v30 = vmul.f32 -1.442695, %v1419_v33 }
 0x2b9   :  { %1705 = vpow2.f32 %v1585_v46  ;;  %v2539_v46 = vld [vmem:[#allocation19_spill] sm:$0xff] }
 0x2ba   :  { %1707 = vpow2.f32 %v1586_v30 }
 0x2c3   :  { %v1706_v22 = vpop.eup %1705 }
 0x2c4   :  { %v1708_v35 = vpop.eup %1707  ;;  %v1426_v39 = vadd.f32 1.0, %v1706_v22  ;;  %v2540_v22 = vld [vmem:[#allocation21_spill] sm:$0xff] }
 0x2c5   :  { %v1427_v20 = vadd.f32 1.0, %v1708_v35 }
 0x2c6   :  { %1709 = vrcp.f32 %v1426_v39  ;;  %v1457_v39 = vld [vmem:[#allocation3 + $0x58] sm:$0xff] }
 0x2c7   :  { %1711 = vrcp.f32 %v1427_v20  ;;  %v1458_v20 = vld [vmem:[#allocation3 + $0x60] sm:$0xff] }
 0x2d0   :  { %v1710_v50 = vpop.eup %1709 }
 0x2d1   :  { %v1712_v55 = vpop.eup %1711  ;;  %v1432_v56 = vmul.f32 %v1710_v50, %v1418_v26  ;;  %v2538_v26 = vld [vmem:[#allocation15_spill] sm:$0xff]  ;;  %v1459_v50 = vld [vmem:[#allocation3 + $0x68] sm:$0xff] }
 0x2d2   :  { %v1433_v59 = vmul.f32 %v1712_v55, %v1419_v33  ;;  %v2541_v55 = vld [vmem:[#allocation23_spill] sm:$0xff] }
 0x2d3   :  { %v1587_v47 = vmul.f32 -1.442695, %v1432_v56 }
 0x2d4   :  { %v1588_v53 = vmul.f32 -1.442695, %v1433_v59  ;;  %v2542_v59 = vld [vmem:[#allocation25_spill] sm:$0xff] }
 0x2d5   :  { %1713 = vpow2.f32 %v1587_v47 }
 0x2d6   :  { %1715 = vpow2.f32 %v1588_v53 }
 0x2df   :  { %v1714_v43 = vpop.eup %1713 }
 0x2e0   :  { %v1716_v38 = vpop.eup %1715  ;;  %v1440_v41 = vadd.f32 1.0, %v1714_v43 }
 0x2e1   :  { %v1441_v40 = vadd.f32 1.0, %v1716_v38  ;;  %v1460_v38 = vld [vmem:[#allocation3 + $0x70] sm:$0xff] }
 0x2e2   :  { %1717 = vrcp.f32 %v1440_v41  ;;  %v1461_v41 = vld [vmem:[#allocation3 + $0x78] sm:$0xff] }
 0x2e3   :  { %1719 = vrcp.f32 %v1441_v40 }
 0x2ec   :  { %v1718_v36 = vpop.eup %1717 }
 0x2ed   :  { %v1720_v57 = vpop.eup %1719 }
 0x2ee   :  { %v1464_v48 = vcombine.low %v1718_v36, %v1720_v57 }
 0x2f0   :  { %v1471_v45 = vrot.slane %v1464_v48, %v1470_v18 }
 0x2f2   :  { %v1472_v24 = vcombine.high %v1471_v45, %v1471_v45  ;;  %v1479_v60 = vrot.slane %v1471_v45, %v1470_v18 }
 0x2f4   :  { %v1486_v2 = vrot.slane %v1472_v24, %v1470_v18  ;;  %v1490_v29 = vrot.slane %v1479_v60, %v1967_v7  ;;  %v1494_v16 = vrot.slane %v1479_v60, %v1982_v25 }
 0x2f6   :  { %v1498_v15 = vrot.slane %v1486_v2, %v1967_v7  ;;  %v1502_v42 = vrot.slane %v1486_v2, %v1982_v25  ;;  %v1507_v34 = vmul.f32 %v1490_v29, %v1899_v9  ;;  %v1508_v63 = vmul.f32 %v1494_v16, %v1907_v13  ;;  %v1453_v7 = vld [vmem:[#allocation3 + $0x38] sm:$0xff] }
 0x2f7   :  { %v1509_v17 = vmul.f32 %v1490_v29, %v2529_v28  ;;  %v1510_v54 = vmul.f32 %v1494_v16, %v2530_v52  ;;  %v1511_v0 = vmul.f32 %v1490_v29, %v2531_v1  ;;  %v1512_v8 = vmul.f32 %v1494_v16, %v2532_v12 }
 0x2f8   :  { %v1513_v25 = vmul.f32 %v1490_v29, %v2533_v11  ;;  %v1514_v9 = vmul.f32 %v1494_v16, %v2534_v21  ;;  %v1515_v13 = vmul.f32 %v1498_v15, %v2535_v23  ;;  %v1516_v31 = vmul.f32 %v1502_v42, %v2536_v51 }
 0x2f9   :  { %v1517_v3 = vmul.f32 %v1498_v15, %v2537_v49  ;;  %v1518_v33 = vmul.f32 %v1502_v42, %v2538_v26  ;;  %v1519_v30 = vmul.f32 %v1498_v15, %v2539_v46  ;;  %v1520_v35 = vmul.f32 %v1502_v42, %v2540_v22 }
 0x2fa   :  { %v1521_v56 = vmul.f32 %v1498_v15, %v2541_v55  ;;  %v1522_v47 = vmul.f32 %v1502_v42, %v2542_v59  ;;  %v1523_v53 = vadd.f32 %v1507_v34, %v1446_v5  ;;  %v1524_v43 = vadd.f32 %v1508_v63, %v1447_v4 }
 0x2fb   :  { %v1525_v40 = vadd.f32 %v1509_v17, %v1448_v19  ;;  %v1526_v62 = vadd.f32 %v1510_v54, %v1449_v32  ;;  %v1527_v61 = vadd.f32 %v1511_v0, %v1450_v37  ;;  %v1528_v10 = vadd.f32 %v1512_v8, %v1451_v44 }
 0x2fc   :  { %v1529_v36 = vadd.f32 %v1513_v25, %v1452_v58  ;;  %v1530_v18 = vadd.f32 %v1514_v9, %v1453_v7  ;;  %v1531_v57 = vadd.f32 %v1515_v13, %v1454_v14  ;;  %v1532_v48 = vadd.f32 %v1516_v31, %v1455_v6  ;;  %1539 = vst [vmem:[#allocation8] sm:$0xff] %v1523_v53 }
 0x2fd   :  { %1540 = vst [vmem:[#allocation8 + $0x8] sm:$0xff] %v1524_v43  ;;  %v1533_v45 = vadd.f32 %v1517_v3, %v1456_v27  ;;  %v1534_v24 = vadd.f32 %v1518_v33, %v1457_v39  ;;  %v1535_v60 = vadd.f32 %v1519_v30, %v1458_v20  ;;  %v1536_v2 = vadd.f32 %v1520_v35, %v1459_v50 }
 0x2fe   :  { %1541 = vst [vmem:[#allocation8 + $0x10] sm:$0xff] %v1525_v40  ;;  %1542 = vst [vmem:[#allocation8 + $0x18] sm:$0xff] %v1526_v62  ;;  %v1537_v29 = vadd.f32 %v1521_v56, %v1460_v38  ;;  %v1538_v16 = vadd.f32 %v1522_v47, %v1461_v41 }
 0x2ff   :  { %1543 = vst [vmem:[#allocation8 + $0x20] sm:$0xff] %v1527_v61  ;;  %1544 = vst [vmem:[#allocation8 + $0x28] sm:$0xff] %v1528_v10 }
 0x300   :  { %1545 = vst [vmem:[#allocation8 + $0x30] sm:$0xff] %v1529_v36  ;;  %1546 = vst [vmem:[#allocation8 + $0x38] sm:$0xff] %v1530_v18 }
 0x301   :  { %1547 = vst [vmem:[#allocation8 + $0x40] sm:$0xff] %v1531_v57  ;;  %1548 = vst [vmem:[#allocation8 + $0x48] sm:$0xff] %v1532_v48 }
 0x302   :  { %1549 = vst [vmem:[#allocation8 + $0x50] sm:$0xff] %v1533_v45  ;;  %1550 = vst [vmem:[#allocation8 + $0x58] sm:$0xff] %v1534_v24 }
 0x303   :  { %1551 = vst [vmem:[#allocation8 + $0x60] sm:$0xff] %v1535_v60  ;;  %1552 = vst [vmem:[#allocation8 + $0x68] sm:$0xff] %v1536_v2 }
 0x304   :  { %1553 = vst [vmem:[#allocation8 + $0x70] sm:$0xff] %v1537_v29  ;;  %1554 = vst [vmem:[#allocation8 + $0x78] sm:$0xff] %v1538_v16 }
 0x305   :  { %1776 = shalt.err (!%p1773_p6)
}
 0x306   :  { %s1777_s23 = scalar_lea.hbm %s2491_s5, 2048 }
 0x307   :  { %p1778_p7 = scmp.ne.s32.totalorder %s2491_s5, %s1777_s23  ;;  %p1781_p8 = scmp.lt.u32.totalorder %s1777_s23, %s2491_s5 }
 0x309   :  { %p1783_p9 = pnand %p1781_p8, %p1778_p7 }
 0x30b   :  { %1786 = shalt.err (!%p1783_p9)
}
 0x30c   :  { %1566 = dma.vmem_to_hbm [thread:$0]  %s1561_s19, 2048, %s2491_s5, [#allocation5], %s1794_s28, %s1794_s28, %s1795_s29  }
 0x30d   :  { %1791 = dma.done.wait [#allocation5], 2048  }
 0x30e   :  { %1792 = vsyncadd [#allocation5], 4294965248 }
 0x30f   :  { %1570 = vsyncpa [#allocation4], 1 }
 0x310   :  { %1571 = vsyncpa [#allocation7], 1 }
 0x311   :  { %1572 = vsyncpa [#allocation5], 1 }

</bundles_post_ra>
